<compile_context>
chip_gen: v7x
topology: tpu7x:2x2x1
jax: 0.10.0
libtpu: 0.0.40
codegen_flags: <defaults>
</compile_context>

<pallas_src>
import functools

import jax
import jax.numpy as jnp
import numpy as np
from jax.experimental import pallas as pl
from jax.experimental.pallas import tpu as pltpu


def _bottleneck_kernel(x_ref, w_ref, bias_ref, w1_ref, b1_ref, w2_ref, b2_ref,
                       out_ref, pad_ref, col_ref, *, H, W, dilation):
    """One batch element per grid step (NHWC, channels on the lane axis).

    x_ref   : (1, H, W, Cin)       bf16  un-padded input tile
    w_ref   : (9*Cin, Cout)        bf16  conv weight, BN scale pre-folded,
                                         rows ordered (kh, kw, cin)
    bias_ref: (1, Cout)            f32   folded BN bias (beta - mean*scale)
    w1_ref  : (Cout, Cr)           f32   SE excitation1 (1x1 conv as matmul)
    b1_ref  : (1, Cr)              f32
    w2_ref  : (Cr, Cout)           f32   SE excitation2
    b2_ref  : (1, Cout)            f32
    out_ref : (1, H, W, Cout)      f32
    pad_ref : (H+2d, W+2d, Cin)    f32   VMEM scratch: zero-padded image
    col_ref : (H, W, 9*Cin)        f32   VMEM scratch: im2col tile
    """
    Cin = x_ref.shape[3]
    Cout = out_ref.shape[3]
    d = dilation
    Hp, Wp = H + 2 * d, W + 2 * d

    # --- in-kernel zero padding (replaces the jnp.pad HBM round trip). ------
    # Scratch staging kept in f32 so unaligned (offset-d) sublane stores stay
    # on the plain 32-bit path; bf16 is used for HBM traffic and the MXU.
    pad_ref[...] = jnp.zeros((Hp, Wp, Cin), jnp.float32)
    pad_ref[d:d + H, d:d + W, :] = x_ref[0].astype(jnp.float32)

    # --- im2col: 9 ref-level tap loads staged into one (H, W, 9*Cin) tile ---
    for kh in range(3):
        for kw in range(3):
            k = kh * 3 + kw
            tap = pad_ref[kh * d: kh * d + H, kw * d: kw * d + W, :]
            col_ref[:, :, k * Cin:(k + 1) * Cin] = tap

    cols = col_ref[...].reshape(H * W, 9 * Cin).astype(jnp.bfloat16)

    # --- single K=9*Cin MXU matmul (bf16 operands, f32 accumulation);
    #     BatchNorm is folded into w_ref, so only the bias add remains. -------
    y = jnp.dot(cols, w_ref[...], preferred_element_type=jnp.float32)
    y = jnp.maximum(y + bias_ref[...], 0.0)                 # (H*W, Cout) f32

    # --- Squeeze-and-Excitation (f32 throughout) ----------------------------
    pooled = jnp.mean(y, axis=0, keepdims=True)             # (1, Cout)
    h1 = jnp.dot(pooled, w1_ref[...], preferred_element_type=jnp.float32)
    h1 = jnp.maximum(h1 + b1_ref[...], 0.0)                 # (1, Cr)
    s = jnp.dot(h1, w2_ref[...], preferred_element_type=jnp.float32)
    s = jax.nn.sigmoid(s + b2_ref[...])                     # (1, Cout)

    y = y * s                                               # channel rescale
    out_ref[...] = y.reshape(1, H, W, Cout).astype(out_ref.dtype)


def bottleneck_block_pallas_nhwc(x_nhwc, params, *, dilation):
    """Native NHWC entry point. x_nhwc: (N, H, W, Cin) f32 -> (N, H, W, Cout) f32."""
    N, H, W, Cin = x_nhwc.shape
    Cout = params["w_hwio"].shape[3]
    Cr = params["w1_mat"].shape[1]
    d = dilation
    Hp, Wp = H + 2 * d, W + 2 * d

    # Fold eval-mode BatchNorm into the conv weight; keep the bias in f32.
    w_folded = params["w_hwio"] * params["bn_scale"][0]       # (3,3,Cin,Cout)
    w_mat = w_folded.reshape(9 * Cin, Cout).astype(jnp.bfloat16)
    bias = params["bn_bias"]                                   # (1, Cout) f32

    # bf16 activations at the boundary: halves HBM/DMA bytes and feeds the
    # MXU at native bf16 rate (accumulation stays f32 in-kernel).
    x_bf16 = x_nhwc.astype(jnp.bfloat16)

    kernel = functools.partial(_bottleneck_kernel, H=H, W=W, dilation=d)

    # Explicit VMEM budget: double-buffered input+output blocks, weights,
    # scratch, plus headroom (stay well under physical VMEM).
    in_bytes = H * W * Cin * 2
    out_bytes = H * W * Cout * 4
    wgt_bytes = (9 * Cin * Cout) * 2 + (3 * Cout + 2 * Cr + Cout * Cr * 2) * 4
    scratch_bytes = (Hp * Wp * Cin + H * W * 9 * Cin) * 4
    vmem_limit = int(min(2 * (in_bytes + out_bytes) + wgt_bytes
                         + scratch_bytes + (16 << 20), 100 << 20))

    out_nhwc = pl.pallas_call(
        kernel,
        out_shape=jax.ShapeDtypeStruct((N, H, W, Cout), jnp.float32),
        grid_spec=pltpu.PrefetchScalarGridSpec(
            num_scalar_prefetch=0,
            grid=(N,),
            in_specs=[
                pl.BlockSpec((1, H, W, Cin), lambda b: (b, 0, 0, 0)),
                pl.BlockSpec((9 * Cin, Cout), lambda b: (0, 0)),
                pl.BlockSpec((1, Cout), lambda b: (0, 0)),
                pl.BlockSpec((Cout, Cr), lambda b: (0, 0)),
                pl.BlockSpec((1, Cr), lambda b: (0, 0)),
                pl.BlockSpec((Cr, Cout), lambda b: (0, 0)),
                pl.BlockSpec((1, Cout), lambda b: (0, 0)),
            ],
            out_specs=pl.BlockSpec((1, H, W, Cout), lambda b: (b, 0, 0, 0)),
            scratch_shapes=[
                pltpu.VMEM((Hp, Wp, Cin), jnp.float32),
                pltpu.VMEM((H, W, 9 * Cin), jnp.float32),
            ],
        ),
        compiler_params=pltpu.CompilerParams(
            dimension_semantics=("parallel",),
            vmem_limit_bytes=vmem_limit),
    )(x_bf16, w_mat, bias, params["w1_mat"], params["b1_row"],
      params["w2_mat"], params["b2_row"])
    return out_nhwc


def bottleneck_block_pallas(x_nchw, params, *, dilation):
    """NCHW wrapper for PyTorch interface parity (transposes only; no pad)."""
    x_nhwc = jnp.transpose(x_nchw, (0, 2, 3, 1))
    out_nhwc = bottleneck_block_pallas_nhwc(x_nhwc, params, dilation=dilation)
    return jnp.transpose(out_nhwc, (0, 3, 1, 2))


def bottleneck_block_reference(x_nchw, params, *, dilation):
    """Pure-JAX reference reproducing the PyTorch forward (eval-mode BN)."""
    w_oihw = jnp.transpose(params["w_hwio"], (3, 2, 0, 1))     # (Cout, Cin, 3, 3)
    out = jax.lax.conv_general_dilated(
        x_nchw, w_oihw,
        window_strides=(1, 1),
        padding=((dilation, dilation), (dilation, dilation)),
        rhs_dilation=(dilation, dilation),
        dimension_numbers=("NCHW", "OIHW", "NCHW"))
    scale = params["bn_scale"][0][None, :, None, None]
    bias = params["bn_bias"][0][None, :, None, None]
    out = jnp.maximum(out * scale + bias, 0.0)

    pooled = jnp.mean(out, axis=(2, 3))                        # (N, Cout)
    h1 = jnp.maximum(pooled @ params["w1_mat"] + params["b1_row"][0], 0.0)
    s = jax.nn.sigmoid(h1 @ params["w2_mat"] + params["b2_row"][0])
    return out * s[:, :, None, None]


def make_params(key, in_channels, out_channels, reduction_ratio):
    """Deterministic synthetic parameters (shapes match the nn.Module)."""
    cr = out_channels // reduction_ratio
    ks = jax.random.split(key, 8)
    w_hwio = 0.1 * jax.random.normal(ks[0], (3, 3, in_channels, out_channels),
                                     jnp.float32)
    gamma = 1.0 + 0.1 * jax.random.normal(ks[1], (out_channels,), jnp.float32)
    beta = 0.1 * jax.random.normal(ks[2], (out_channels,), jnp.float32)
    run_mean = 0.1 * jax.random.normal(ks[3], (out_channels,), jnp.float32)
    run_var = jnp.abs(jax.random.normal(ks[4], (out_channels,), jnp.float32)) + 0.5
    eps = 1e-5
    bn_scale = gamma / jnp.sqrt(run_var + eps)
    bn_bias = beta - run_mean * bn_scale

    # excitation1: Conv2d(out, out//r, 1) weight (Cr, Cout, 1, 1) -> matmul (Cout, Cr)
    w1 = 0.1 * jax.random.normal(ks[5], (cr, out_channels), jnp.float32)
    b1 = 0.1 * jax.random.normal(ks[6], (cr,), jnp.float32)
    # excitation2: Conv2d(out//r, out, 1) weight (Cout, Cr, 1, 1) -> matmul (Cr, Cout)
    w2 = 0.1 * jax.random.normal(ks[7], (out_channels, cr), jnp.float32)
    b2 = 0.05 * jnp.ones((out_channels,), jnp.float32)

    return {
        "w_hwio": w_hwio,
        "bn_scale": bn_scale[None, :],
        "bn_bias": bn_bias[None, :],
        "w1_mat": w1.T,                 # (Cout, Cr)
        "b1_row": b1[None, :],          # (1, Cr)
        "w2_mat": w2.T,                 # (Cr, Cout)
        "b2_row": b2[None, :],          # (1, Cout)
    }


if __name__ == "__main__":
    N, Cin, Cout, H, W = 2, 4, 8, 16, 16
    dilation_rate = 1
    reduction_ratio = 2

    key = jax.random.PRNGKey(0)
    kx, kp = jax.random.split(key)
    x = jax.random.normal(kx, (N, Cin, H, W), jnp.float32)
    params = make_params(kp, Cin, Cout, reduction_ratio)

    out = bottleneck_block_pallas(x, params, dilation=dilation_rate)
    out = jax.block_until_ready(out)

    ref = bottleneck_block_reference(x, params, dilation=dilation_rate)
    ref = jax.block_until_ready(ref)

    assert out.shape == (N, Cout, H, W)
    # bf16 MXU operands vs. a full-f32 reference -> relaxed tolerance.
    np.testing.assert_allclose(np.asarray(out), np.asarray(ref),
                               rtol=5e-2, atol=5e-2)
    print("KERNEL_OK")
</pallas_src>

<mosaic_0001>
module attributes {stable_mosaic.version = 11 : i64} {
  func.func @_bottleneck_kernel(%arg0: i32, %arg1: memref<1x16x16x4xbf16, #tpu.memory_space<vmem>>, %arg2: memref<36x8xbf16, #tpu.memory_space<vmem>>, %arg3: memref<1x8xf32, #tpu.memory_space<vmem>>, %arg4: memref<8x4xf32, #tpu.memory_space<vmem>>, %arg5: memref<1x4xf32, #tpu.memory_space<vmem>>, %arg6: memref<4x8xf32, #tpu.memory_space<vmem>>, %arg7: memref<1x8xf32, #tpu.memory_space<vmem>>, %arg8: memref<1x16x16x8xf32, #tpu.memory_space<vmem>>, %arg9: memref<18x18x4xf32, #tpu.memory_space<vmem>>, %arg10: memref<16x16x36xf32, #tpu.memory_space<vmem>>) attributes {dimension_semantics = [#tpu.dimension_semantics<parallel>], iteration_bounds = array<i64: 2>, scalar_prefetch = 0 : i64, scratch_operands = 2 : i64, tpu.core_type = #tpu.core_type<tc>, window_params = [{transform_indices = @transform_0, window_bounds = array<i64: 1, 16, 16, 4>}, {pipeline_mode = #tpu.pipeline_mode<synchronous>, transform_indices = @transform_1, window_bounds = array<i64: 36, 8>}, {pipeline_mode = #tpu.pipeline_mode<synchronous>, transform_indices = @transform_2, window_bounds = array<i64: 1, 8>}, {pipeline_mode = #tpu.pipeline_mode<synchronous>, transform_indices = @transform_3, window_bounds = array<i64: 8, 4>}, {pipeline_mode = #tpu.pipeline_mode<synchronous>, transform_indices = @transform_4, window_bounds = array<i64: 1, 4>}, {pipeline_mode = #tpu.pipeline_mode<synchronous>, transform_indices = @transform_5, window_bounds = array<i64: 4, 8>}, {pipeline_mode = #tpu.pipeline_mode<synchronous>, transform_indices = @transform_6, window_bounds = array<i64: 1, 8>}, {transform_indices = @transform_7, window_bounds = array<i64: 1, 16, 16, 8>}]} {
    %cst = arith.constant 0.000000e+00 : f32
    %0 = vector.broadcast %cst : f32 to vector<18x18x4xf32>
    %c0 = arith.constant 0 : index
    %c0_0 = arith.constant 0 : index
    %c0_1 = arith.constant 0 : index
    %1 = vector.load %arg9[%c0, %c0_0, %c0_1] : memref<18x18x4xf32, #tpu.memory_space<vmem>>, vector<18x18x4xf32>
    tpu.vector_store %arg9[%c0, %c0_0, %c0_1], %0 {strides = array<i32>} : memref<18x18x4xf32, #tpu.memory_space<vmem>>, vector<18x18x4xf32>,
    %c0_2 = arith.constant 0 : index
    %c0_3 = arith.constant 0 : index
    %c0_4 = arith.constant 0 : index
    %c0_5 = arith.constant 0 : index
    %2 = vector.load %arg1[%c0_2, %c0_3, %c0_4, %c0_5] : memref<1x16x16x4xbf16, #tpu.memory_space<vmem>>, vector<1x16x16x4xbf16>
    %3 = vector.shape_cast %2 : vector<1x16x16x4xbf16> to vector<16x16x4xbf16>
    %4 = arith.extf %3 : vector<16x16x4xbf16> to vector<16x16x4xf32>
    %c1 = arith.constant 1 : index
    %c1_6 = arith.constant 1 : index
    %c0_7 = arith.constant 0 : index
    %5 = vector.load %arg9[%c1, %c1_6, %c0_7] : memref<18x18x4xf32, #tpu.memory_space<vmem>>, vector<16x16x4xf32>
    tpu.vector_store %arg9[%c1, %c1_6, %c0_7], %4 {strides = array<i32>} : memref<18x18x4xf32, #tpu.memory_space<vmem>>, vector<16x16x4xf32>,
    %c0_8 = arith.constant 0 : index
    %c0_9 = arith.constant 0 : index
    %c0_10 = arith.constant 0 : index
    %6 = vector.load %arg9[%c0_8, %c0_9, %c0_10] : memref<18x18x4xf32, #tpu.memory_space<vmem>>, vector<16x16x4xf32>
    %c0_11 = arith.constant 0 : index
    %c0_12 = arith.constant 0 : index
    %c0_13 = arith.constant 0 : index
    %7 = vector.load %arg10[%c0_11, %c0_12, %c0_13] : memref<16x16x36xf32, #tpu.memory_space<vmem>>, vector<16x16x4xf32>
    tpu.vector_store %arg10[%c0_11, %c0_12, %c0_13], %6 {strides = array<i32>} : memref<16x16x36xf32, #tpu.memory_space<vmem>>, vector<16x16x4xf32>,
    %c0_14 = arith.constant 0 : index
    %c1_15 = arith.constant 1 : index
    %c0_16 = arith.constant 0 : index
    %8 = vector.load %arg9[%c0_14, %c1_15, %c0_16] : memref<18x18x4xf32, #tpu.memory_space<vmem>>, vector<16x16x4xf32>
    %c0_17 = arith.constant 0 : index
    %c0_18 = arith.constant 0 : index
    %c4 = arith.constant 4 : index
    %9 = vector.load %arg10[%c0_17, %c0_18, %c4] : memref<16x16x36xf32, #tpu.memory_space<vmem>>, vector<16x16x4xf32>
    tpu.vector_store %arg10[%c0_17, %c0_18, %c4], %8 {strides = array<i32>} : memref<16x16x36xf32, #tpu.memory_space<vmem>>, vector<16x16x4xf32>,
    %c0_19 = arith.constant 0 : index
    %c2 = arith.constant 2 : index
    %c0_20 = arith.constant 0 : index
    %10 = vector.load %arg9[%c0_19, %c2, %c0_20] : memref<18x18x4xf32, #tpu.memory_space<vmem>>, vector<16x16x4xf32>
    %c0_21 = arith.constant 0 : index
    %c0_22 = arith.constant 0 : index
    %c8 = arith.constant 8 : index
    %11 = vector.load %arg10[%c0_21, %c0_22, %c8] : memref<16x16x36xf32, #tpu.memory_space<vmem>>, vector<16x16x4xf32>
    tpu.vector_store %arg10[%c0_21, %c0_22, %c8], %10 {strides = array<i32>} : memref<16x16x36xf32, #tpu.memory_space<vmem>>, vector<16x16x4xf32>,
    %c1_23 = arith.constant 1 : index
    %c0_24 = arith.constant 0 : index
    %c0_25 = arith.constant 0 : index
    %12 = vector.load %arg9[%c1_23, %c0_24, %c0_25] : memref<18x18x4xf32, #tpu.memory_space<vmem>>, vector<16x16x4xf32>
    %c0_26 = arith.constant 0 : index
    %c0_27 = arith.constant 0 : index
    %c12 = arith.constant 12 : index
    %13 = vector.load %arg10[%c0_26, %c0_27, %c12] : memref<16x16x36xf32, #tpu.memory_space<vmem>>, vector<16x16x4xf32>
    tpu.vector_store %arg10[%c0_26, %c0_27, %c12], %12 {strides = array<i32>} : memref<16x16x36xf32, #tpu.memory_space<vmem>>, vector<16x16x4xf32>,
    %c1_28 = arith.constant 1 : index
    %c1_29 = arith.constant 1 : index
    %c0_30 = arith.constant 0 : index
    %14 = vector.load %arg9[%c1_28, %c1_29, %c0_30] : memref<18x18x4xf32, #tpu.memory_space<vmem>>, vector<16x16x4xf32>
    %c0_31 = arith.constant 0 : index
    %c0_32 = arith.constant 0 : index
    %c16 = arith.constant 16 : index
    %15 = vector.load %arg10[%c0_31, %c0_32, %c16] : memref<16x16x36xf32, #tpu.memory_space<vmem>>, vector<16x16x4xf32>
    tpu.vector_store %arg10[%c0_31, %c0_32, %c16], %14 {strides = array<i32>} : memref<16x16x36xf32, #tpu.memory_space<vmem>>, vector<16x16x4xf32>,
    %c1_33 = arith.constant 1 : index
    %c2_34 = arith.constant 2 : index
    %c0_35 = arith.constant 0 : index
    %16 = vector.load %arg9[%c1_33, %c2_34, %c0_35] : memref<18x18x4xf32, #tpu.memory_space<vmem>>, vector<16x16x4xf32>
    %c0_36 = arith.constant 0 : index
    %c0_37 = arith.constant 0 : index
    %c20 = arith.constant 20 : index
    %17 = vector.load %arg10[%c0_36, %c0_37, %c20] : memref<16x16x36xf32, #tpu.memory_space<vmem>>, vector<16x16x4xf32>
    tpu.vector_store %arg10[%c0_36, %c0_37, %c20], %16 {strides = array<i32>} : memref<16x16x36xf32, #tpu.memory_space<vmem>>, vector<16x16x4xf32>,
    %c2_38 = arith.constant 2 : index
    %c0_39 = arith.constant 0 : index
    %c0_40 = arith.constant 0 : index
    %18 = vector.load %arg9[%c2_38, %c0_39, %c0_40] : memref<18x18x4xf32, #tpu.memory_space<vmem>>, vector<16x16x4xf32>
    %c0_41 = arith.constant 0 : index
    %c0_42 = arith.constant 0 : index
    %c24 = arith.constant 24 : index
    %19 = vector.load %arg10[%c0_41, %c0_42, %c24] : memref<16x16x36xf32, #tpu.memory_space<vmem>>, vector<16x16x4xf32>
    tpu.vector_store %arg10[%c0_41, %c0_42, %c24], %18 {strides = array<i32>} : memref<16x16x36xf32, #tpu.memory_space<vmem>>, vector<16x16x4xf32>,
    %c2_43 = arith.constant 2 : index
    %c1_44 = arith.constant 1 : index
    %c0_45 = arith.constant 0 : index
    %20 = vector.load %arg9[%c2_43, %c1_44, %c0_45] : memref<18x18x4xf32, #tpu.memory_space<vmem>>, vector<16x16x4xf32>
    %c0_46 = arith.constant 0 : index
    %c0_47 = arith.constant 0 : index
    %c28 = arith.constant 28 : index
    %21 = vector.load %arg10[%c0_46, %c0_47, %c28] : memref<16x16x36xf32, #tpu.memory_space<vmem>>, vector<16x16x4xf32>
    tpu.vector_store %arg10[%c0_46, %c0_47, %c28], %20 {strides = array<i32>} : memref<16x16x36xf32, #tpu.memory_space<vmem>>, vector<16x16x4xf32>,
    %c2_48 = arith.constant 2 : index
    %c2_49 = arith.constant 2 : index
    %c0_50 = arith.constant 0 : index
    %22 = vector.load %arg9[%c2_48, %c2_49, %c0_50] : memref<18x18x4xf32, #tpu.memory_space<vmem>>, vector<16x16x4xf32>
    %c0_51 = arith.constant 0 : index
    %c0_52 = arith.constant 0 : index
    %c32 = arith.constant 32 : index
    %23 = vector.load %arg10[%c0_51, %c0_52, %c32] : memref<16x16x36xf32, #tpu.memory_space<vmem>>, vector<16x16x4xf32>
    tpu.vector_store %arg10[%c0_51, %c0_52, %c32], %22 {strides = array<i32>} : memref<16x16x36xf32, #tpu.memory_space<vmem>>, vector<16x16x4xf32>,
    %c0_53 = arith.constant 0 : index
    %c0_54 = arith.constant 0 : index
    %c0_55 = arith.constant 0 : index
    %24 = vector.load %arg10[%c0_53, %c0_54, %c0_55] : memref<16x16x36xf32, #tpu.memory_space<vmem>>, vector<16x16x36xf32>
    %25 = vector.shape_cast %24 : vector<16x16x36xf32> to vector<256x36xf32>
    %26 = arith.truncf %25 : vector<256x36xf32> to vector<256x36xbf16>
    %c0_56 = arith.constant 0 : index
    %c0_57 = arith.constant 0 : index
    %27 = vector.load %arg2[%c0_56, %c0_57] : memref<36x8xbf16, #tpu.memory_space<vmem>>, vector<36x8xbf16>
    %cst_58 = arith.constant dense<0.000000e+00> : vector<256x8xf32>
    %28 = tpu.matmul %26, %27, %cst_58 {dimension_numbers = #tpu.dot_dimension_numbers<[1], [0], [0], [1], [0, 0, 1, 1], [], []>} : vector<256x36xbf16>, vector<36x8xbf16>, vector<256x8xf32> -> vector<256x8xf32>
    %c0_59 = arith.constant 0 : index
    %c0_60 = arith.constant 0 : index
    %29 = vector.load %arg3[%c0_59, %c0_60] : memref<1x8xf32, #tpu.memory_space<vmem>>, vector<1x8xf32>
    %30 = vector.broadcast %29 : vector<1x8xf32> to vector<256x8xf32>
    %31 = arith.addf %28, %30 : vector<256x8xf32>
    %cst_61 = arith.constant 0.000000e+00 : f32
    %32 = vector.broadcast %cst_61 : f32 to vector<256x8xf32>
    %33 = arith.maximumf %31, %32 : vector<256x8xf32>
    %cst_62 = arith.constant dense<0.000000e+00> : vector<8xf32>
    %34 = vector.multi_reduction <add>, %33, %cst_62 [0] : vector<256x8xf32> to vector<8xf32>
    %35 = vector.shape_cast %34 : vector<8xf32> to vector<1x8xf32>
    %cst_63 = arith.constant 2.560000e+02 : f32
    %36 = vector.broadcast %cst_63 : f32 to vector<1x8xf32>
    %37 = arith.divf %35, %36 : vector<1x8xf32>
    %c0_64 = arith.constant 0 : index
    %c0_65 = arith.constant 0 : index
    %38 = vector.load %arg4[%c0_64, %c0_65] : memref<8x4xf32, #tpu.memory_space<vmem>>, vector<8x4xf32>
    %cst_66 = arith.constant dense<0.000000e+00> : vector<1x4xf32>
    %39 = tpu.matmul %37, %38, %cst_66 {dimension_numbers = #tpu.dot_dimension_numbers<[1], [0], [0], [1], [0, 0, 1, 1], [], []>} : vector<1x8xf32>, vector<8x4xf32>, vector<1x4xf32> -> vector<1x4xf32>
    %c0_67 = arith.constant 0 : index
    %c0_68 = arith.constant 0 : index
    %40 = vector.load %arg5[%c0_67, %c0_68] : memref<1x4xf32, #tpu.memory_space<vmem>>, vector<1x4xf32>
    %41 = arith.addf %39, %40 : vector<1x4xf32>
    %cst_69 = arith.constant 0.000000e+00 : f32
    %42 = vector.broadcast %cst_69 : f32 to vector<1x4xf32>
    %43 = arith.maximumf %41, %42 : vector<1x4xf32>
    %c0_70 = arith.constant 0 : index
    %c0_71 = arith.constant 0 : index
    %44 = vector.load %arg6[%c0_70, %c0_71] : memref<4x8xf32, #tpu.memory_space<vmem>>, vector<4x8xf32>
    %cst_72 = arith.constant dense<0.000000e+00> : vector<1x8xf32>
    %45 = tpu.matmul %43, %44, %cst_72 {dimension_numbers = #tpu.dot_dimension_numbers<[1], [0], [0], [1], [0, 0, 1, 1], [], []>} : vector<1x4xf32>, vector<4x8xf32>, vector<1x8xf32> -> vector<1x8xf32>
    %c0_73 = arith.constant 0 : index
    %c0_74 = arith.constant 0 : index
    %46 = vector.load %arg7[%c0_73, %c0_74] : memref<1x8xf32, #tpu.memory_space<vmem>>, vector<1x8xf32>
    %47 = arith.addf %45, %46 : vector<1x8xf32>
    %48 = arith.negf %47 : vector<1x8xf32>
    %49 = math.exp %48 : vector<1x8xf32>
    %cst_75 = arith.constant 1.000000e+00 : f32
    %50 = vector.broadcast %cst_75 : f32 to vector<1x8xf32>
    %51 = arith.addf %50, %49 : vector<1x8xf32>
    %52 = arith.divf %50, %51 : vector<1x8xf32>
    %53 = vector.broadcast %52 : vector<1x8xf32> to vector<256x8xf32>
    %54 = arith.mulf %33, %53 : vector<256x8xf32>
    %55 = vector.shape_cast %54 : vector<256x8xf32> to vector<1x16x16x8xf32>
    %c0_76 = arith.constant 0 : index
    %c0_77 = arith.constant 0 : index
    %c0_78 = arith.constant 0 : index
    %c0_79 = arith.constant 0 : index
    %56 = vector.load %arg8[%c0_76, %c0_77, %c0_78, %c0_79] : memref<1x16x16x8xf32, #tpu.memory_space<vmem>>, vector<1x16x16x8xf32>
    tpu.vector_store %arg8[%c0_76, %c0_77, %c0_78, %c0_79], %55 {strides = array<i32>} : memref<1x16x16x8xf32, #tpu.memory_space<vmem>>, vector<1x16x16x8xf32>,
    return
  }
  func.func @transform_0(%arg0: i32) -> (i32, i32, i32, i32) {
    %c0_i32 = arith.constant 0 : i32
    %c0_i32_0 = arith.constant 0 : i32
    %c0_i32_1 = arith.constant 0 : i32
    %c0_i32_2 = arith.constant 0 : i32
    return %arg0, %c0_i32, %c0_i32_0, %c0_i32_1 : i32, i32, i32, i32
  }
  func.func @transform_1(%arg0: i32) -> (i32, i32) {
    %c0_i32 = arith.constant 0 : i32
    %c0_i32_0 = arith.constant 0 : i32
    %c0_i32_1 = arith.constant 0 : i32
    return %c0_i32, %c0_i32_0 : i32, i32
  }
  func.func @transform_2(%arg0: i32) -> (i32, i32) {
    %c0_i32 = arith.constant 0 : i32
    %c0_i32_0 = arith.constant 0 : i32
    %c0_i32_1 = arith.constant 0 : i32
    return %c0_i32, %c0_i32_0 : i32, i32
  }
  func.func @transform_3(%arg0: i32) -> (i32, i32) {
    %c0_i32 = arith.constant 0 : i32
    %c0_i32_0 = arith.constant 0 : i32
    %c0_i32_1 = arith.constant 0 : i32
    return %c0_i32, %c0_i32_0 : i32, i32
  }
  func.func @transform_4(%arg0: i32) -> (i32, i32) {
    %c0_i32 = arith.constant 0 : i32
    %c0_i32_0 = arith.constant 0 : i32
    %c0_i32_1 = arith.constant 0 : i32
    return %c0_i32, %c0_i32_0 : i32, i32
  }
  func.func @transform_5(%arg0: i32) -> (i32, i32) {
    %c0_i32 = arith.constant 0 : i32
    %c0_i32_0 = arith.constant 0 : i32
    %c0_i32_1 = arith.constant 0 : i32
    return %c0_i32, %c0_i32_0 : i32, i32
  }
  func.func @transform_6(%arg0: i32) -> (i32, i32) {
    %c0_i32 = arith.constant 0 : i32
    %c0_i32_0 = arith.constant 0 : i32
    %c0_i32_1 = arith.constant 0 : i32
    return %c0_i32, %c0_i32_0 : i32, i32
  }
  func.func @transform_7(%arg0: i32) -> (i32, i32, i32, i32) {
    %c0_i32 = arith.constant 0 : i32
    %c0_i32_0 = arith.constant 0 : i32
    %c0_i32_1 = arith.constant 0 : i32
    %c0_i32_2 = arith.constant 0 : i32
    return %arg0, %c0_i32, %c0_i32_0, %c0_i32_1 : i32, i32, i32, i32
  }
}

</mosaic_0001>

<bundles_post_ra>
// kernel: tpu_custom_call.1
= control target key start
LH: loop header
LB: loop body
LE: loop exit
PB: predicated region body
PF: predicated region fallthrough
CT: control target
= control target key end

     0   :  { %s2997_s24 = smov 0   ;;  %s4528_s0 = inlined_call_operand.vmem [shape: bf16[2,16,16,4], index: 0, kind: input, shape index: {}]   ;;  %s4529_s1 = inlined_call_operand.vmem [shape: bf16[36,8], index: 1, kind: input, shape index: {}]   ;;  %s4530_s2 = inlined_call_operand.vmem [shape: f32[1,8], index: 2, kind: input, shape index: {}]   ;;  %s4531_s3 = inlined_call_operand.vmem [shape: f32[8,4], index: 3, kind: input, shape index: {}]   ;;  %s4532_s4 = inlined_call_operand.vmem [shape: f32[1,4], index: 4, kind: input, shape index: {}]   ;;  %s4533_s5 = inlined_call_operand.vmem [shape: f32[4,8], index: 5, kind: input, shape index: {}]   ;;  %s4534_s6 = inlined_call_operand.vmem [shape: f32[1,8], index: 6, kind: input, shape index: {}]   ;;  %s4535_s7 = inlined_call_operand.vmem [shape: f32[2,16,16,8], index: 7, kind: output, shape index: {}]  }
   0x1 LB: > { %s2719_s25 = sadd.s32 4294967295, %s2945_s24   ;;  %p2723_p0 = scmp.ge.s32.totalorder %s2945_s24, 1  ;;  %s2945_s24 = sphi %s2997_s24, %s17_s24  }
   0x2   : > { %p237_p1 = scmp.lt.s32.totalorder %s2945_s24, 3 }
   0x4   : > { %p238_p2 = pnand %p2723_p0, %p237_p1 }
   0x5   : > { %vm280_vm0 = vcmask (!%p238_p2), 31744   ;;  %vm283_vm1 = vcmask (!%p238_p2), 25600   ;;  %v2947_v0 = vmov (!%p238_p2), 0.0   ;;  %p269_p3 = scmp.lt.s32.totalorder (!%p238_p2), %s2719_s25, 1  ;;  %s2948_s30 = smov (!%p238_p2), 4   ;;  %v2932_v51 = vld [vmem:[%s4529_s1] sm:$0xff] (!%p238_p2)  }
   0x6   : > { %241 = sbr.rel (%p238_p2) target bundleno = 1387 (0x56b), region = 48  ;;  %281 = vst.msk [vmem:[#allocation2] sm:$0xff] (!%p238_p2), %vm280_vm0, %v2947_v0  ;;  %282 = vst.msk [vmem:[#allocation2 + $0x8] sm:$0xff] (!%p238_p2), %vm280_vm0, %v2947_v0  ;;  %s2949_s8 = smov (!%p238_p2), 8   ;;  %2858 = vmatprep.subr.bf16.mxu0 (!%p238_p2), %v2932_v51  ;;  %2906 = vmatprep.subr.bf16.mxu1 (!%p238_p2), %v2932_v51  ;;  %v2933_v53 = vld [vmem:[%s4529_s1 + $0x8] sm:$0xff] (!%p238_p2)   ;;  %vm2166_vm2 = vcmask (!%p238_p2), 1041408  }
   0x7   : > { %285 = vst.msk [vmem:[#allocation2 + $0x18] sm:$0xff] (!%p238_p2), %vm280_vm0, %v2947_v0  ;;  %286 = vst.msk [vmem:[#allocation2 + $0x20] sm:$0xff] (!%p238_p2), %vm280_vm0, %v2947_v0  ;;  %s2950_s9 = smov (!%p238_p2), 12   ;;  %s2951_s10 = smov (!%p238_p2), 16   ;;  %2859 = vmatpush3.bf16.msra.mxu0 (!%p238_p2), %v2932_v51  ;;  %2909 = vmatpush3.bf16.msra.mxu1 (!%p238_p2), %v2932_v51  ;;  %vm657_vm3 = vcmask (!%p238_p2), 64544   ;;  %vm850_vm4 = vcmask (!%p238_p2), 97344  }
   0x8   : > { %288 = vst.msk [vmem:[#allocation2 + $0x30] sm:$0xff] (!%p238_p2), %vm280_vm0, %v2947_v0  ;;  %289 = vst.msk [vmem:[#allocation2 + $0x38] sm:$0xff] (!%p238_p2), %vm280_vm0, %v2947_v0  ;;  %s2952_s11 = smov (!%p238_p2), 20   ;;  %s2953_s12 = smov (!%p238_p2), 24   ;;  %2860 = vmatprep.subr.bf16.mxu0 (!%p238_p2), %v2933_v53  ;;  %2907 = vmatprep.subr.bf16.mxu1 (!%p238_p2), %v2933_v53  ;;  %vm1043_vm5 = vcmask (!%p238_p2), 130144   ;;  %vm1236_vm6 = vcmask (!%p238_p2), 162944  }
   0x9   : > { %291 = vst.msk [vmem:[#allocation2 + $0x48] sm:$0xff] (!%p238_p2), %vm280_vm0, %v2947_v0  ;;  %292 = vst.msk [vmem:[#allocation2 + $0x50] sm:$0xff] (!%p238_p2), %vm280_vm0, %v2947_v0  ;;  %s2954_s13 = smov (!%p238_p2), 28   ;;  %s2955_s16 = smov (!%p238_p2), 32   ;;  %vm1429_vm7 = vcmask (!%p238_p2), 195744   ;;  %vm1623_vm8 = vcmask (!%p238_p2), 228544  }
   0xa   : > { %294 = vst.msk [vmem:[#allocation2 + $0x60] sm:$0xff] (!%p238_p2), %vm280_vm0, %v2947_v0  ;;  %295 = vst.msk [vmem:[#allocation2 + $0x68] sm:$0xff] (!%p238_p2), %vm280_vm0, %v2947_v0  ;;  %v2934_v54 = vld [vmem:[%s4529_s1 + $0x10] ss:$0 sps:$4 sm:$0x33] (!%p238_p2)   ;;  %vm1816_vm9 = vcmask (!%p238_p2), 261344  }
   0xb   : > { %297 = vst.msk [vmem:[#allocation2 + $0x78] sm:$0xff] (!%p238_p2), %vm280_vm0, %v2947_v0  ;;  %298 = vst.msk [vmem:[#allocation2 + $0x80] sm:$0xff] (!%p238_p2), %vm280_vm0, %v2947_v0  ;;  %2861 = vmatpush3.bf16.msra.mxu0 (!%p238_p2), %v2933_v53  ;;  %2910 = vmatpush3.bf16.msra.mxu1 (!%p238_p2), %v2933_v53  ;;  %v2168_v56 = vsel (!%p238_p2), %vm2166_vm2, %v2934_v54, 0  ;;  %vm2009_vm10 = vcmask (!%p238_p2), 294144   ;;  %vm2117_vm11 = vcmask (!%p238_p2), 293888   ;;  %vm2956_vm12 = vmmov (!%p238_p2), 0  }
   0xc   : > { %300 = vst.msk [vmem:[#allocation2 + $0x90] sm:$0xff] (!%p238_p2), %vm280_vm0, %v2947_v0  ;;  %301 = vst.msk [vmem:[#allocation2 + $0x98] sm:$0xff] (!%p238_p2), %vm280_vm0, %v2947_v0  ;;  %2912 = vmatprep.subr.msk.bf16.mxu0 (!%p238_p2), %vm2166_vm2, %v2934_v54  ;;  %2913 = vmatprep.subr.msk.bf16.mxu1 (!%p238_p2), %vm2166_vm2, %v2934_v54  ;;  %vm2363_vm13 = vcmask (!%p238_p2), 64512   ;;  %vm2516_vm14 = vcmask (!%p238_p2), 1043456  }
   0xd   : > { %303 = vst.msk [vmem:[#allocation2 + $0xa8] sm:$0xff] %vm280_vm0, %v2947_v0  ;;  %304 = vst.msk [vmem:[#allocation2 + $0xb0] sm:$0xff] %vm280_vm0, %v2947_v0  ;;  %s4567_s25 = smov (!%p269_p3, %s2719_s25), 1  ;;  %v497_v4 = vld [vmem:[#allocation2 + $0x1] sm:$0xff] }
   0xe   : > { %306 = vst.msk [vmem:[#allocation2 + $0xc0] sm:$0xff] %vm280_vm0, %v2947_v0  ;;  %307 = vst.msk [vmem:[#allocation2 + $0xc8] sm:$0xff] %vm280_vm0, %v2947_v0  ;;  %s2754_s26 = sshll.u32 %s4567_s25, 7  ;;  %561 = vrot.lane.b32.xlu0 %v497_v4, %s2948_s30  ;;  %v433_v19 = vld [vmem:[#allocation2] sm:$0xff]  ;;  %v434_v20 = vld [vmem:[#allocation2 + $0x8] sm:$0xff] }
   0xf   : > { %309 = vst.msk [vmem:[#allocation2 + $0xd8] sm:$0xff] %vm280_vm0, %v2947_v0  ;;  %310 = vst.msk [vmem:[#allocation2 + $0xe0] sm:$0xff] %vm280_vm0, %v2947_v0  ;;  %s3123_s29 = scalar_lea.vmem %s4528_s0, %s2754_s26  ;;  %v690_v21 = vld [vmem:[#allocation2 + $0x2] sm:$0xff]  ;;  %2863 = vmatpush3.bf16.msra.mxu0 %v2168_v56  ;;  %2911 = vmatpush3.bf16.msra.mxu1 %v2168_v56 }
  0x10   : > { %312 = vst.msk [vmem:[#allocation2 + $0xf0] sm:$0xff] %vm280_vm0, %v2947_v0  ;;  %313 = vst.msk [vmem:[#allocation2 + $0xf8] sm:$0xff] %vm280_vm0, %v2947_v0  ;;  %v2757_v1 = vld [vmem:[%s3123_s29] sm:$0xff]   ;;  %v2820_v2 = vld [vmem:[%s3123_s29 + $0x8] sm:$0xff]   ;;  %2896 = vmatprep.subr.mxu1 %v2947_v0 }
  0x11   : > { %315 = vst.msk [vmem:[#allocation2 + $0x108] sm:$0xff] %vm280_vm0, %v2947_v0  ;;  %316 = vst.msk [vmem:[#allocation2 + $0x110] sm:$0xff] %vm280_vm0, %v2947_v0  ;;  %v2821_v3 = vld [vmem:[%s3123_s29 + $0x10] sm:$0xff]   ;;  %v2758_v6 = vunpack.c.l.bf16 %v2757_v1  ;;  %v2759_v7 = vunpack.c.h.bf16 %v2757_v1  ;;  %v2762_v8 = vunpack.c.l.bf16 %v2820_v2  ;;  %v2763_v9 = vunpack.c.h.bf16 %v2820_v2  ;;  %v2822_v12 = vld [vmem:[%s3123_s29 + $0x18] sm:$0xff]  }
  0x12   : > { %318 = vst.msk [vmem:[#allocation2 + $0x120] sm:$0xff] %vm280_vm0, %v2947_v0  ;;  %319 = vst.msk [vmem:[#allocation2 + $0x128] sm:$0xff] %vm280_vm0, %v2947_v0  ;;  %v2766_v10 = vunpack.c.l.bf16 %v2821_v3  ;;  %v2767_v11 = vunpack.c.h.bf16 %v2821_v3  ;;  %v2823_v13 = vld [vmem:[%s3123_s29 + $0x20] sm:$0xff]   ;;  %v2770_v15 = vunpack.c.l.bf16 %v2822_v12  ;;  %v2771_v16 = vunpack.c.h.bf16 %v2822_v12  ;;  %v2824_v36 = vld [vmem:[%s3123_s29 + $0x28] sm:$0xff]  }
  0x13   : > { %321 = vst.msk [vmem:[#allocation2 + $0x138] sm:$0xff] %vm280_vm0, %v2947_v0  ;;  %322 = vst.msk [vmem:[#allocation2 + $0x140] sm:$0xff] %vm280_vm0, %v2947_v0  ;;  %v2774_v17 = vunpack.c.l.bf16 %v2823_v13  ;;  %v2775_v18 = vunpack.c.h.bf16 %v2823_v13  ;;  %v2778_v37 = vunpack.c.l.bf16 %v2824_v36  ;;  %v2779_v38 = vunpack.c.h.bf16 %v2824_v36  ;;  %v2825_v45 = vld [vmem:[%s3123_s29 + $0x30] sm:$0xff]   ;;  %v2826_v58 = vld [vmem:[%s3123_s29 + $0x38] sm:$0xff]  }
  0x14   : > { %324 = vst.msk [vmem:[#allocation2 + $0x150] sm:$0xff] %vm280_vm0, %v2947_v0  ;;  %325 = vst.msk [vmem:[#allocation2 + $0x158] sm:$0xff] %vm280_vm0, %v2947_v0  ;;  %v2782_v46 = vunpack.c.l.bf16 %v2825_v45  ;;  %v2783_v47 = vunpack.c.h.bf16 %v2825_v45  ;;  %v2786_v59 = vunpack.c.l.bf16 %v2826_v58  ;;  %v2787_v60 = vunpack.c.h.bf16 %v2826_v58  ;;  %v2827_v4 = vld [vmem:[%s3123_s29 + $0x40] sm:$0xff]  }
  0x15   : > { %327 = vst.msk [vmem:[#allocation2 + $0x168] sm:$0xff] %vm280_vm0, %v2947_v0  ;;  %328 = vst.msk [vmem:[#allocation2 + $0x170] sm:$0xff] %vm280_vm0, %v2947_v0 }
  0x16   : > { %330 = vst.msk [vmem:[#allocation2 + $0x180] sm:$0xff] %vm280_vm0, %v2947_v0  ;;  %331 = vst.msk [vmem:[#allocation2 + $0x188] sm:$0xff] %vm280_vm0, %v2947_v0 }
  0x17   : > { %333 = vst.msk [vmem:[#allocation2 + $0x198] sm:$0xff] %vm280_vm0, %v2947_v0  ;;  %334 = vst.msk [vmem:[#allocation2 + $0x1a0] sm:$0xff] %vm280_vm0, %v2947_v0 }
  0x18   : > { %284 = vst.msk [vmem:[#allocation2 + $0x10] sm:$0x3] %vm283_vm1, %v2947_v0  ;;  %287 = vst.msk [vmem:[#allocation2 + $0x28] sm:$0x3] %vm283_vm1, %v2947_v0 }
  0x19   : > { %290 = vst.msk [vmem:[#allocation2 + $0x40] sm:$0x3] %vm283_vm1, %v2947_v0  ;;  %293 = vst.msk [vmem:[#allocation2 + $0x58] sm:$0x3] %vm283_vm1, %v2947_v0 }
  0x1a   : > { %296 = vst.msk [vmem:[#allocation2 + $0x70] sm:$0x3] %vm283_vm1, %v2947_v0  ;;  %299 = vst.msk [vmem:[#allocation2 + $0x88] sm:$0x3] %vm283_vm1, %v2947_v0 }
  0x1b   : > { %302 = vst.msk [vmem:[#allocation2 + $0xa0] sm:$0x3] %vm283_vm1, %v2947_v0  ;;  %305 = vst.msk [vmem:[#allocation2 + $0xb8] sm:$0x3] %vm283_vm1, %v2947_v0 }
  0x1c   : > { %308 = vst.msk [vmem:[#allocation2 + $0xd0] sm:$0x3] %vm283_vm1, %v2947_v0  ;;  %311 = vst.msk [vmem:[#allocation2 + $0xe8] sm:$0x3] %vm283_vm1, %v2947_v0 }
  0x1d   : > { %314 = vst.msk [vmem:[#allocation2 + $0x100] sm:$0x3] %vm283_vm1, %v2947_v0  ;;  %317 = vst.msk [vmem:[#allocation2 + $0x118] sm:$0x3] %vm283_vm1, %v2947_v0 }
  0x1e   : > { %320 = vst.msk [vmem:[#allocation2 + $0x130] sm:$0x3] %vm283_vm1, %v2947_v0  ;;  %323 = vst.msk [vmem:[#allocation2 + $0x148] sm:$0x3] %vm283_vm1, %v2947_v0 }
  0x1f   : > { %326 = vst.msk [vmem:[#allocation2 + $0x160] sm:$0x3] %vm283_vm1, %v2947_v0  ;;  %329 = vst.msk [vmem:[#allocation2 + $0x178] sm:$0x3] %vm283_vm1, %v2947_v0  ;;  %v691_v5 = vld [vmem:[#allocation2 + $0xa] sm:$0xff] }
  0x20   : > { %332 = vst.msk [vmem:[#allocation2 + $0x190] sm:$0x3] %vm283_vm1, %v2947_v0  ;;  %335 = vst.msk [vmem:[#allocation2 + $0x1a8] sm:$0x3] %vm283_vm1, %v2947_v0  ;;  %756 = vrot.lane.b32.xlu1 %v691_v5, %s2949_s8  ;;  %v498_v14 = vld [vmem:[#allocation2 + $0x9] sm:$0xff]  ;;  %v2790_v5 = vunpack.c.l.bf16 %v2827_v4 }
  0x21   : > { %401 = vst.msk [vmem:[#allocation2 + $0x19] sm:$0xff] %vm280_vm0, %v2758_v6  ;;  %402 = vst.msk [vmem:[#allocation2 + $0x21] sm:$0xff] %vm280_vm0, %v2759_v7  ;;  %563 = vrot.lane.b32.xlu0 %v498_v14, %s2948_s30  ;;  %v2791_v6 = vunpack.c.h.bf16 %v2827_v4 }
  0x22   : > { %403 = vst.msk [vmem:[#allocation2 + $0x31] sm:$0xff] %vm280_vm0, %v2762_v8  ;;  %404 = vst.msk [vmem:[#allocation2 + $0x39] sm:$0xff] %vm280_vm0, %v2763_v9 }
  0x23   : > { %405 = vst.msk [vmem:[#allocation2 + $0x49] sm:$0xff] %vm280_vm0, %v2766_v10  ;;  %406 = vst.msk [vmem:[#allocation2 + $0x51] sm:$0xff] %vm280_vm0, %v2767_v11 }
  0x24   : > { %465 = vst.msk [vmem:[#allocation3] sm:$0xff] %vm280_vm0, %v433_v19  ;;  %466 = vst.msk [vmem:[#allocation3 + $0x8] sm:$0xff] %vm280_vm0, %v434_v20 }
  0x25   : > { %407 = vst.msk [vmem:[#allocation2 + $0x61] sm:$0xff] %vm280_vm0, %v2770_v15  ;;  %408 = vst.msk [vmem:[#allocation2 + $0x69] sm:$0xff] %vm280_vm0, %v2771_v16  ;;  %754 = vrot.lane.b32.xlu0 %v690_v21, %s2949_s8 }
  0x26   : > { %409 = vst.msk [vmem:[#allocation2 + $0x79] sm:$0xff] %vm280_vm0, %v2774_v17  ;;  %410 = vst.msk [vmem:[#allocation2 + $0x81] sm:$0xff] %vm280_vm0, %v2775_v18 }
  0x27   : > { %411 = vst.msk [vmem:[#allocation2 + $0x91] sm:$0xff] %vm280_vm0, %v2778_v37  ;;  %412 = vst.msk [vmem:[#allocation2 + $0x99] sm:$0xff] %vm280_vm0, %v2779_v38 }
  0x28   : > { %v499_v22 = vld [vmem:[#allocation2 + $0x19] sm:$0xff]  ;;  %v500_v26 = vld [vmem:[#allocation2 + $0x21] sm:$0xff]  ;;  %413 = vst.msk [vmem:[#allocation2 + $0xa9] sm:$0xff] %vm280_vm0, %v2782_v46  ;;  %414 = vst.msk [vmem:[#allocation2 + $0xb1] sm:$0xff] %vm280_vm0, %v2783_v47 }
  0x29   : > { %565 = vrot.lane.b32.xlu1 %v499_v22, %s2948_s30  ;;  %v692_v23 = vld [vmem:[#allocation2 + $0x1a] sm:$0xff]  ;;  %v885_v27 = vld [vmem:[#allocation2 + $0x30] sm:$0xff]  ;;  %v693_v31 = vld [vmem:[#allocation2 + $0x22] sm:$0xff]  ;;  %415 = vst.msk [vmem:[#allocation2 + $0xc1] sm:$0xff] %vm280_vm0, %v2786_v59 }
  0x2a   : > { %v883_v24 = vld [vmem:[#allocation2 + $0x18] sm:$0xff]  ;;  %v884_v25 = vld [vmem:[#allocation2 + $0x20] sm:$0xff]  ;;  %469 = vst.msk [vmem:[#allocation3 + $0x20] sm:$0xff] %vm280_vm0, %v885_v27  ;;  %758 = vrot.lane.b32.xlu0 %v692_v23, %s2949_s8  ;;  %v3152_v29 = vld [vmem:[#allocation2 + $0x48] sm:$0xff] }
  0x2b   : > { %v886_v28 = vld [vmem:[#allocation2 + $0x38] sm:$0xff]  ;;  %467 = vst.msk [vmem:[#allocation3 + $0x10] sm:$0xff] %vm280_vm0, %v883_v24  ;;  %468 = vst.msk [vmem:[#allocation3 + $0x18] sm:$0xff] %vm280_vm0, %v884_v25  ;;  %v3154_v30 = vld [vmem:[#allocation2 + $0x50] sm:$0xff] }
  0x2c   : > { %470 = vst.msk [vmem:[#allocation3 + $0x28] sm:$0xff] %vm280_vm0, %v886_v28  ;;  %471 = vst.msk [vmem:[#allocation3 + $0x30] sm:$0xff] %vm280_vm0, %v3152_v29  ;;  %v3161_v32 = vld [vmem:[#allocation2 + $0x60] sm:$0xff]  ;;  %v3163_v33 = vld [vmem:[#allocation2 + $0x68] sm:$0xff] }
  0x2d   : > { %567 = vrot.lane.b32.xlu1 %v500_v26, %s2948_s30  ;;  %472 = vst.msk [vmem:[#allocation3 + $0x38] sm:$0xff] %vm280_vm0, %v3154_v30  ;;  %473 = vst.msk [vmem:[#allocation3 + $0x40] sm:$0xff] %vm280_vm0, %v3161_v32  ;;  %v3170_v34 = vld [vmem:[#allocation2 + $0x78] sm:$0xff]  ;;  %v3172_v35 = vld [vmem:[#allocation2 + $0x80] sm:$0xff] }
  0x2e   : > { %474 = vst.msk [vmem:[#allocation3 + $0x48] sm:$0xff] %vm280_vm0, %v3163_v33  ;;  %947 = vrot.lane.b32.xlu0 %v883_v24, %s2950_s9  ;;  %475 = vst.msk [vmem:[#allocation3 + $0x50] sm:$0xff] %vm280_vm0, %v3170_v34  ;;  %v1078_v39 = vld [vmem:[#allocation2 + $0x31] sm:$0xff]  ;;  %v1079_v42 = vld [vmem:[#allocation2 + $0x39] sm:$0xff] }
  0x2f   : > { %476 = vst.msk [vmem:[#allocation3 + $0x58] sm:$0xff] %vm280_vm0, %v3172_v35  ;;  %v3187_v40 = vld [vmem:[#allocation2 + $0x90] sm:$0xff]  ;;  %v3189_v41 = vld [vmem:[#allocation2 + $0x98] sm:$0xff]  ;;  %v3209_v48 = vld [vmem:[#allocation2 + $0xa8] sm:$0xff] }
  0x30   : > { %477 = vst.msk [vmem:[#allocation3 + $0x60] sm:$0xff] %vm280_vm0, %v3187_v40  ;;  %478 = vst.msk [vmem:[#allocation3 + $0x68] sm:$0xff] %vm280_vm0, %v3189_v41  ;;  %v1271_v43 = vld [vmem:[#allocation2 + $0x32] sm:$0xff]  ;;  %v1272_v44 = vld [vmem:[#allocation2 + $0x3a] sm:$0xff] }
  0x31   : > { %760 = vrot.lane.b32.xlu1 %v693_v31, %s2949_s8  ;;  %v3211_v49 = vld [vmem:[#allocation2 + $0xb0] sm:$0xff]  ;;  %479 = vst.msk [vmem:[#allocation3 + $0x70] sm:$0xff] %vm280_vm0, %v3209_v48  ;;  %416 = vst.msk [vmem:[#allocation2 + $0xc9] sm:$0xff] %vm280_vm0, %v2787_v60  ;;  %v3254_v61 = vld [vmem:[#allocation2 + $0xc0] sm:$0xff] }
  0x32   : > { %951 = vrot.lane.b32.xlu0 %v885_v27, %s2950_s9  ;;  %v1658_v50 = vld [vmem:[#allocation2 + $0x49] sm:$0xff]  ;;  %480 = vst.msk [vmem:[#allocation3 + $0x78] sm:$0xff] %vm280_vm0, %v3211_v49  ;;  %v1659_v52 = vld [vmem:[#allocation2 + $0x51] sm:$0xff]  ;;  %v1082_v63 = vld [vmem:[#allocation2 + $0x61] sm:$0xff] }
  0x33   : > { %v1851_v55 = vld [vmem:[#allocation2 + $0x4a] sm:$0xff]  ;;  %v1852_v57 = vld [vmem:[#allocation2 + $0x52] sm:$0xff]  ;;  %481 = vst.msk [vmem:[#allocation3 + $0x80] sm:$0xff] %vm280_vm0, %v3254_v61  ;;  %v1275_v2 = vld [vmem:[#allocation2 + $0x62] sm:$0xff] }
  0x34   : > { %v1083_v1 = vld [vmem:[#allocation2 + $0x69] sm:$0xff]  ;;  %417 = vst.msk [vmem:[#allocation2 + $0xd9] sm:$0xff] %vm280_vm0, %v2790_v5  ;;  %418 = vst.msk [vmem:[#allocation2 + $0xe1] sm:$0xff] %vm280_vm0, %v2791_v6  ;;  %v3287_v9 = vld [vmem:[#allocation2 + $0x79] sm:$0xff] }
  0x35   : > { %949 = vrot.lane.b32.xlu1 %v884_v25, %s2950_s9  ;;  %v1276_v3 = vld [vmem:[#allocation2 + $0x6a] sm:$0xff]  ;;  %v3297_v13 = vld [vmem:[#allocation2 + $0x81] sm:$0xff]  ;;  %v3378_v45 = vld [vmem:[#allocation2 + $0x92] sm:$0xff] }
  0x36   : > { %1140 = vrot.lane.b32.xlu0 %v499_v22, %s2951_s10  ;;  %v3308_v16 = vld [vmem:[#allocation2 + $0x7a] sm:$0xff]  ;;  %v3315_v19 = vld [vmem:[#allocation2 + $0x82] sm:$0xff]  ;;  %v3358_v38 = vld [vmem:[#allocation2 + $0x91] sm:$0xff] }
  0x38   : > { %v3256_v62 = vld [vmem:[#allocation2 + $0xc8] sm:$0xff] }
  0x39   : > { %953 = vrot.lane.b32.xlu1 %v886_v28, %s2950_s9  ;;  %482 = vst.msk [vmem:[#allocation3 + $0x88] sm:$0xff] %vm280_vm0, %v3256_v62 }
  0x3a   : > { %1144 = vrot.lane.b32.xlu0 %v1078_v39, %s2951_s10 }
  0x3b   : > { %v3281_v7 = vld [vmem:[#allocation2 + $0xd8] sm:$0xff]  ;;  %v3283_v8 = vld [vmem:[#allocation2 + $0xe0] sm:$0xff] }
  0x3c   : > { %483 = vst.msk [vmem:[#allocation3 + $0x90] sm:$0xff] %vm280_vm0, %v3281_v7  ;;  %484 = vst.msk [vmem:[#allocation3 + $0x98] sm:$0xff] %vm280_vm0, %v3283_v8 }
  0x3d   : > { %1142 = vrot.lane.b32.xlu1 %v500_v26, %s2951_s10 }
  0x3e   : > { %1333 = vrot.lane.b32.xlu0 %v692_v23, %s2952_s11 }
  0x41   : > { %1146 = vrot.lane.b32.xlu1 %v1079_v42, %s2951_s10 }
  0x42   : > { %1337 = vrot.lane.b32.xlu0 %v1271_v43, %s2952_s11 }
  0x45   : > { %1335 = vrot.lane.b32.xlu1 %v693_v31, %s2952_s11 }
  0x46   : > { %1527 = vrot.lane.b32.xlu0 %v885_v27, %s2953_s12  ;;  %v2828_v27 = vld [vmem:[%s3123_s29 + $0x48] sm:$0xff]  }
  0x49   : > { %1339 = vrot.lane.b32.xlu1 %v1272_v44, %s2952_s11 }
  0x4a   : > { %1531 = vrot.lane.b32.xlu0 %v3152_v29, %s2953_s12 }
  0x4d   : > { %1529 = vrot.lane.b32.xlu1 %v886_v28, %s2953_s12 }
  0x4e   : > { %1720 = vrot.lane.b32.xlu0 %v1078_v39, %s2954_s13 }
  0x51   : > { %1533 = vrot.lane.b32.xlu1 %v3154_v30, %s2953_s12 }
  0x52   : > { %1724 = vrot.lane.b32.xlu0 %v1658_v50, %s2954_s13 }
  0x55   : > { %1722 = vrot.lane.b32.xlu1 %v1079_v42, %s2954_s13 }
  0x56   : > { %1913 = vrot.lane.b32.xlu0 %v1271_v43, %s2955_s16 }
  0x59   : > { %1726 = vrot.lane.b32.xlu1 %v1659_v52, %s2954_s13 }
  0x5a   : > { %569 = vrot.lane.b32.xlu0 %v1078_v39, %s2948_s30 }
  0x5d   : > { %1915 = vrot.lane.b32.xlu1 %v1272_v44, %s2955_s16 }
  0x5e   : > { %1917 = vrot.lane.b32.xlu0 %v1851_v55, %s2955_s16 }
  0x61   : > { %571 = vrot.lane.b32.xlu1 %v1079_v42, %s2948_s30  ;;  %v3370_v42 = vld [vmem:[#allocation2 + $0x99] sm:$0xff] }
  0x62   : > { %573 = vrot.lane.b32.xlu0 %v1658_v50, %s2948_s30 }
  0x65   : > { %1919 = vrot.lane.b32.xlu1 %v1852_v57, %s2955_s16 }
  0x66   : > { %762 = vrot.lane.b32.xlu0 %v1271_v43, %s2949_s8 }
  0x69   : > { %575 = vrot.lane.b32.xlu1 %v1659_v52, %s2948_s30 }
  0x6a   : > { %766 = vrot.lane.b32.xlu0 %v1851_v55, %s2949_s8 }
  0x6d   : > { %764 = vrot.lane.b32.xlu1 %v1272_v44, %s2949_s8 }
  0x6e   : > { %955 = vrot.lane.b32.xlu0 %v3152_v29, %s2950_s9  ;;  %v2794_v29 = vunpack.c.l.bf16 %v2828_v27 }
  0x70   : > { %419 = vst.msk [vmem:[#allocation2 + $0xf1] sm:$0xff] %vm280_vm0, %v2794_v29 }
  0x71   : > { %768 = vrot.lane.b32.xlu1 %v1852_v57, %s2949_s8 }
  0x72   : > { %959 = vrot.lane.b32.xlu0 %v3161_v32, %s2950_s9 }
  0x75   : > { %957 = vrot.lane.b32.xlu1 %v3154_v30, %s2950_s9  ;;  %v2795_v30 = vunpack.c.h.bf16 %v2828_v27 }
  0x76   : > { %1148 = vrot.lane.b32.xlu0 %v1658_v50, %s2951_s10  ;;  %v3386_v50 = vld [vmem:[#allocation2 + $0x9a] sm:$0xff] }
  0x77   : > { %420 = vst.msk [vmem:[#allocation2 + $0xf9] sm:$0xff] %vm280_vm0, %v2795_v30  ;;  %v3352_v36 = vld [vmem:[#allocation2 + $0xf0] sm:$0xff] }
  0x78   : > { %485 = vst.msk [vmem:[#allocation3 + $0xa0] sm:$0xff] %vm280_vm0, %v3352_v36 }
  0x79   : > { %961 = vrot.lane.b32.xlu1 %v3163_v33, %s2950_s9 }
  0x7a   : > { %1152 = vrot.lane.b32.xlu0 %v1082_v63, %s2951_s10 }
  0x7d   : > { %1150 = vrot.lane.b32.xlu1 %v1659_v52, %s2951_s10  ;;  %v2829_v52 = vld [vmem:[%s3123_s29 + $0x50] sm:$0xff]  }
  0x7e   : > { %1341 = vrot.lane.b32.xlu0 %v1851_v55, %s2952_s11  ;;  %v3354_v37 = vld [vmem:[#allocation2 + $0xf8] sm:$0xff]  ;;  %v2798_v54 = vunpack.c.l.bf16 %v2829_v52  ;;  %v2799_v55 = vunpack.c.h.bf16 %v2829_v52 }
  0x7f   : > { %486 = vst.msk [vmem:[#allocation3 + $0xa8] sm:$0xff] %vm280_vm0, %v3354_v37 }
  0x80   : > { %v562_v10 = vpop.permute.xlu0 %561  ;;  %421 = vst.msk [vmem:[#allocation2 + $0x109] sm:$0xff] %vm280_vm0, %v2798_v54  ;;  %422 = vst.msk [vmem:[#allocation2 + $0x111] sm:$0xff] %vm280_vm0, %v2799_v55 }
  0x81   : > { %1154 = vrot.lane.b32.xlu1 %v1083_v1, %s2951_s10  ;;  %658 = vst.msk [vmem:[#allocation3] sm:$0xff] %vm657_vm3, %v562_v10 }
  0x82   : > { %1345 = vrot.lane.b32.xlu0 %v1275_v2, %s2952_s11 }
  0x85   : > { %1343 = vrot.lane.b32.xlu1 %v1852_v57, %s2952_s11 }
  0x86   : > { %1535 = vrot.lane.b32.xlu0 %v3161_v32, %s2953_s12 }
  0x87   : > { %v3407_v59 = vld [vmem:[#allocation2 + $0x108] sm:$0xff]  ;;  %v3409_v60 = vld [vmem:[#allocation2 + $0x110] sm:$0xff] }
  0x88   : > { %487 = vst.msk [vmem:[#allocation3 + $0xb0] sm:$0xff] %vm280_vm0, %v3407_v59  ;;  %488 = vst.msk [vmem:[#allocation3 + $0xb8] sm:$0xff] %vm280_vm0, %v3409_v60 }
  0x89   : > { %1347 = vrot.lane.b32.xlu1 %v1276_v3, %s2952_s11 }
  0x8a   : > { %1539 = vrot.lane.b32.xlu0 %v3170_v34, %s2953_s12 }
  0x8d   : > { %1537 = vrot.lane.b32.xlu1 %v3163_v33, %s2953_s12 }
  0x8e   : > { %1728 = vrot.lane.b32.xlu0 %v1082_v63, %s2954_s13 }
  0x91   : > { %1541 = vrot.lane.b32.xlu1 %v3172_v35, %s2953_s12 }
  0x92   : > { %1732 = vrot.lane.b32.xlu0 %v3287_v9, %s2954_s13  ;;  %v757_v11 = vpop.permute.xlu1 %756 }
  0x93   : > { %v564_v12 = vpop.permute.xlu0 %563 }
  0x94   : > { %659 = vst.msk [vmem:[#allocation3 + $0x8] sm:$0xff] %vm657_vm3, %v564_v12 }
  0x95   : > { %1730 = vrot.lane.b32.xlu1 %v1083_v1, %s2954_s13  ;;  %852 = vst.msk [vmem:[#allocation3 + $0x8] sm:$0xff] %vm850_vm4, %v757_v11 }
  0x96   : > { %1921 = vrot.lane.b32.xlu0 %v1275_v2, %s2955_s16 }
  0x97   : > { %v755_v14 = vpop.permute.xlu0 %754 }
  0x98   : > { %851 = vst.msk [vmem:[#allocation3] sm:$0xff] %vm850_vm4, %v755_v14 }
  0x99   : > { %1734 = vrot.lane.b32.xlu1 %v3297_v13, %s2954_s13 }
  0x9a   : > { %577 = vrot.lane.b32.xlu0 %v1082_v63, %s2948_s30  ;;  %v3413_v63 = vld [vmem:[#allocation2 + $0xa9] sm:$0xff] }
  0x9b   : > { %v566_v15 = vpop.permute.xlu1 %565 }
  0x9c   : > { %660 = vst.msk [vmem:[#allocation3 + $0x10] sm:$0xff] %vm657_vm3, %v566_v15  ;;  %v759_v17 = vpop.permute.xlu0 %758 }
  0x9d   : > { %1923 = vrot.lane.b32.xlu1 %v1276_v3, %s2955_s16  ;;  %853 = vst.msk [vmem:[#allocation3 + $0x10] sm:$0xff] %vm850_vm4, %v759_v17 }
  0x9e   : > { %1925 = vrot.lane.b32.xlu0 %v3308_v16, %s2955_s16 }
  0x9f   : > { %v568_v18 = vpop.permute.xlu1 %567 }
  0xa0   : > { %661 = vst.msk [vmem:[#allocation3 + $0x18] sm:$0xff] %vm657_vm3, %v568_v18  ;;  %v948_v20 = vpop.permute.xlu0 %947  ;;  %v3449_v18 = vld [vmem:[#allocation2 + $0xb2] sm:$0xff] }
  0xa1   : > { %579 = vrot.lane.b32.xlu1 %v1083_v1, %s2948_s30  ;;  %1044 = vst.msk [vmem:[#allocation3] sm:$0xff] %vm1043_vm5, %v948_v20 }
  0xa2   : > { %581 = vrot.lane.b32.xlu0 %v3287_v9, %s2948_s30 }
  0xa3   : > { %v761_v21 = vpop.permute.xlu1 %760 }
  0xa4   : > { %854 = vst.msk [vmem:[#allocation3 + $0x18] sm:$0xff] %vm850_vm4, %v761_v21  ;;  %v952_v22 = vpop.permute.xlu0 %951 }
  0xa5   : > { %1927 = vrot.lane.b32.xlu1 %v3315_v19, %s2955_s16  ;;  %1046 = vst.msk [vmem:[#allocation3 + $0x10] sm:$0xff] %vm1043_vm5, %v952_v22 }
  0xa6   : > { %770 = vrot.lane.b32.xlu0 %v1275_v2, %s2949_s8 }
  0xa7   : > { %v950_v23 = vpop.permute.xlu1 %949 }
  0xa8   : > { %1045 = vst.msk [vmem:[#allocation3 + $0x8] sm:$0xff] %vm1043_vm5, %v950_v23  ;;  %v1141_v24 = vpop.permute.xlu0 %1140 }
  0xa9   : > { %583 = vrot.lane.b32.xlu1 %v3297_v13, %s2948_s30  ;;  %1237 = vst.msk [vmem:[#allocation3] sm:$0xff] %vm1236_vm6, %v1141_v24 }
  0xaa   : > { %774 = vrot.lane.b32.xlu0 %v3308_v16, %s2949_s8 }
  0xab   : > { %v954_v25 = vpop.permute.xlu1 %953 }
  0xac   : > { %1047 = vst.msk [vmem:[#allocation3 + $0x18] sm:$0xff] %vm1043_vm5, %v954_v25  ;;  %v1145_v26 = vpop.permute.xlu0 %1144 }
  0xad   : > { %772 = vrot.lane.b32.xlu1 %v1276_v3, %s2949_s8  ;;  %1239 = vst.msk [vmem:[#allocation3 + $0x10] sm:$0xff] %vm1236_vm6, %v1145_v26  ;;  %v3425_v3 = vld [vmem:[#allocation2 + $0xb1] sm:$0xff] }
  0xae   : > { %963 = vrot.lane.b32.xlu0 %v3170_v34, %s2950_s9  ;;  %v2830_v26 = vld [vmem:[%s3123_s29 + $0x58] sm:$0xff]  }
  0xaf   : > { %v1143_v28 = vpop.permute.xlu1 %1142  ;;  %v2803_v29 = vunpack.c.h.bf16 %v2830_v26 }
  0xb0   : > { %1238 = vst.msk [vmem:[#allocation3 + $0x8] sm:$0xff] %vm1236_vm6, %v1143_v28  ;;  %v1334_v31 = vpop.permute.xlu0 %1333  ;;  %v2802_v28 = vunpack.c.l.bf16 %v2830_v26 }
  0xb1   : > { %776 = vrot.lane.b32.xlu1 %v3315_v19, %s2949_s8  ;;  %1430 = vst.msk [vmem:[#allocation3] sm:$0xff] %vm1429_vm7, %v1334_v31 }
  0xb2   : > { %967 = vrot.lane.b32.xlu0 %v3187_v40, %s2950_s9  ;;  %423 = vst.msk [vmem:[#allocation2 + $0x121] sm:$0xff] %vm280_vm0, %v2802_v28  ;;  %424 = vst.msk [vmem:[#allocation2 + $0x129] sm:$0xff] %vm280_vm0, %v2803_v29 }
  0xb3   : > { %v1147_v32 = vpop.permute.xlu1 %1146 }
  0xb4   : > { %1240 = vst.msk [vmem:[#allocation3 + $0x18] sm:$0xff] %vm1236_vm6, %v1147_v32  ;;  %v1338_v33 = vpop.permute.xlu0 %1337 }
  0xb5   : > { %965 = vrot.lane.b32.xlu1 %v3172_v35, %s2950_s9  ;;  %1432 = vst.msk [vmem:[#allocation3 + $0x10] sm:$0xff] %vm1429_vm7, %v1338_v33 }
  0xb6   : > { %1156 = vrot.lane.b32.xlu0 %v3287_v9, %s2951_s10 }
  0xb7   : > { %v1336_v34 = vpop.permute.xlu1 %1335 }
  0xb8   : > { %1431 = vst.msk [vmem:[#allocation3 + $0x8] sm:$0xff] %vm1429_vm7, %v1336_v34  ;;  %v1528_v35 = vpop.permute.xlu0 %1527 }
  0xb9   : > { %969 = vrot.lane.b32.xlu1 %v3189_v41, %s2950_s9  ;;  %1624 = vst.msk [vmem:[#allocation3] sm:$0xff] %vm1623_vm8, %v1528_v35  ;;  %v3488_v33 = vld [vmem:[#allocation2 + $0x120] sm:$0xff]  ;;  %v3490_v34 = vld [vmem:[#allocation2 + $0x128] sm:$0xff] }
  0xba   : > { %1160 = vrot.lane.b32.xlu0 %v3358_v38, %s2951_s10  ;;  %489 = vst.msk [vmem:[#allocation3 + $0xc0] sm:$0xff] %vm280_vm0, %v3488_v33  ;;  %490 = vst.msk [vmem:[#allocation3 + $0xc8] sm:$0xff] %vm280_vm0, %v3490_v34 }
  0xbb   : > { %v1340_v39 = vpop.permute.xlu1 %1339 }
  0xbc   : > { %1433 = vst.msk [vmem:[#allocation3 + $0x18] sm:$0xff] %vm1429_vm7, %v1340_v39  ;;  %v1532_v43 = vpop.permute.xlu0 %1531  ;;  %v3506_v39 = vld [vmem:[#allocation2 + $0xc9] sm:$0xff] }
  0xbd   : > { %1158 = vrot.lane.b32.xlu1 %v3297_v13, %s2951_s10  ;;  %1626 = vst.msk [vmem:[#allocation3 + $0x10] sm:$0xff] %vm1623_vm8, %v1532_v43  ;;  %v3440_v13 = vld [vmem:[#allocation2 + $0xaa] sm:$0xff] }
  0xbe   : > { %1349 = vrot.lane.b32.xlu0 %v3308_v16, %s2952_s11 }
  0xbf   : > { %v1530_v44 = vpop.permute.xlu1 %1529 }
  0xc0   : > { %1625 = vst.msk [vmem:[#allocation3 + $0x8] sm:$0xff] %vm1623_vm8, %v1530_v44  ;;  %v1721_v46 = vpop.permute.xlu0 %1720  ;;  %v3514_v44 = vld [vmem:[#allocation2 + $0xc2] sm:$0xff] }
  0xc1   : > { %1162 = vrot.lane.b32.xlu1 %v3370_v42, %s2951_s10  ;;  %1817 = vst.msk [vmem:[#allocation3] sm:$0xff] %vm1816_vm9, %v1721_v46 }
  0xc2   : > { %1353 = vrot.lane.b32.xlu0 %v3378_v45, %s2952_s11 }
  0xc3   : > { %v1534_v47 = vpop.permute.xlu1 %1533 }
  0xc4   : > { %1627 = vst.msk [vmem:[#allocation3 + $0x18] sm:$0xff] %vm1623_vm8, %v1534_v47  ;;  %v1725_v51 = vpop.permute.xlu0 %1724  ;;  %v3522_v47 = vld [vmem:[#allocation2 + $0xca] sm:$0xff] }
  0xc5   : > { %1351 = vrot.lane.b32.xlu1 %v3315_v19, %s2952_s11  ;;  %1819 = vst.msk [vmem:[#allocation3 + $0x10] sm:$0xff] %vm1816_vm9, %v1725_v51  ;;  %v2831_v51 = vld [vmem:[%s3123_s29 + $0x60] sm:$0xff]  }
  0xc6   : > { %1543 = vrot.lane.b32.xlu0 %v3187_v40, %s2953_s12  ;;  %v2807_v54 = vunpack.c.h.bf16 %v2831_v51 }
  0xc7   : > { %v1723_v53 = vpop.permute.xlu1 %1722 }
  0xc8   : > { %1818 = vst.msk [vmem:[#allocation3 + $0x8] sm:$0xff] %vm1816_vm9, %v1723_v53  ;;  %v1914_v56 = vpop.permute.xlu0 %1913  ;;  %v2806_v53 = vunpack.c.l.bf16 %v2831_v51 }
  0xc9   : > { %1355 = vrot.lane.b32.xlu1 %v3386_v50, %s2952_s11  ;;  %2010 = vst.msk [vmem:[#allocation3] sm:$0xff] %vm2009_vm10, %v1914_v56 }
  0xca   : > { %1547 = vrot.lane.b32.xlu0 %v3209_v48, %s2953_s12  ;;  %425 = vst.msk [vmem:[#allocation2 + $0x139] sm:$0xff] %vm280_vm0, %v2806_v53  ;;  %426 = vst.msk [vmem:[#allocation2 + $0x141] sm:$0xff] %vm280_vm0, %v2807_v54 }
  0xcb   : > { %v1727_v57 = vpop.permute.xlu1 %1726 }
  0xcc   : > { %1820 = vst.msk [vmem:[#allocation3 + $0x18] sm:$0xff] %vm1816_vm9, %v1727_v57  ;;  %v570_v40 = vpop.permute.xlu0 %569 }
  0xcd   : > { %1545 = vrot.lane.b32.xlu1 %v3189_v41, %s2953_s12  ;;  %662 = vst.msk [vmem:[#allocation3 + $0x20] sm:$0xff] %vm657_vm3, %v570_v40 }
  0xce   : > { %1736 = vrot.lane.b32.xlu0 %v3358_v38, %s2954_s13 }
  0xcf   : > { %v1916_v58 = vpop.permute.xlu1 %1915 }
  0xd0   : > { %2011 = vst.msk [vmem:[#allocation3 + $0x8] sm:$0xff] %vm2009_vm10, %v1916_v58  ;;  %v1918_v41 = vpop.permute.xlu0 %1917  ;;  %v2042_v2 = vld [vmem:[#allocation3] sm:$0xff] }
  0xd1   : > { %1549 = vrot.lane.b32.xlu1 %v3211_v49, %s2953_s12  ;;  %2012 = vst.msk [vmem:[#allocation3 + $0x10] sm:$0xff] %vm2009_vm10, %v1918_v41  ;;  %v3543_v40 = vld [vmem:[#allocation2 + $0x138] sm:$0xff]  ;;  %v3545_v58 = vld [vmem:[#allocation2 + $0x140] sm:$0xff] }
  0xd2   : > { %1740 = vrot.lane.b32.xlu0 %v3413_v63, %s2954_s13  ;;  %491 = vst.msk [vmem:[#allocation3 + $0xd0] sm:$0xff] %vm280_vm0, %v3543_v40  ;;  %492 = vst.msk [vmem:[#allocation3 + $0xd8] sm:$0xff] %vm280_vm0, %v3545_v58 }
  0xd3   : > { %v572_v1 = vpop.permute.xlu1 %571 }
  0xd4   : > { %663 = vst.msk [vmem:[#allocation3 + $0x28] sm:$0xff] %vm657_vm3, %v572_v1  ;;  %v574_v4 = vpop.permute.xlu0 %573 }
  0xd5   : > { %1738 = vrot.lane.b32.xlu1 %v3370_v42, %s2954_s13  ;;  %664 = vst.msk [vmem:[#allocation3 + $0x30] sm:$0xff] %vm657_vm3, %v574_v4 }
  0xd6   : > { %1929 = vrot.lane.b32.xlu0 %v3378_v45, %s2955_s16 }
  0xd7   : > { %v1920_v5 = vpop.permute.xlu1 %1919  ;;  %v2043_v6 = vld [vmem:[#allocation3 + $0x8] sm:$0xff] }
  0xd8   : > { %2013 = vst.msk [vmem:[#allocation3 + $0x18] sm:$0xff] %vm2009_vm10, %v1920_v5  ;;  %v2074_v9 = vpack.c.bf16 %v2043_v6, %v2042_v2  ;;  %v763_v10 = vpop.permute.xlu0 %762  ;;  %v2044_v12 = vld [vmem:[#allocation3 + $0x10] sm:$0xff] }
  0xd9   : > { %1742 = vrot.lane.b32.xlu1 %v3425_v3, %s2954_s13  ;;  %855 = vst.msk [vmem:[#allocation3 + $0x20] sm:$0xff] %vm850_vm4, %v763_v10  ;;  %v3561_v2 = vld [vmem:[#allocation2 + $0xe1] sm:$0xff] }
  0xda   : > { %2864 = vmatprep.mubr.msk.bf16.mxu0 %vm2117_vm11, %v2074_v9  ;;  %585 = vrot.lane.b32.xlu0 %v3358_v38, %s2948_s30  ;;  %v3494_v38 = vld [vmem:[#allocation2 + $0xc1] sm:$0xff] }
  0xdb   : > { %v576_v11 = vpop.permute.xlu1 %575 }
  0xdc   : > { %665 = vst.msk [vmem:[#allocation3 + $0x38] sm:$0xff] %vm657_vm3, %v576_v11  ;;  %v767_v14 = vpop.permute.xlu0 %766 }
  0xdd   : > { %1931 = vrot.lane.b32.xlu1 %v3386_v50, %s2955_s16  ;;  %857 = vst.msk [vmem:[#allocation3 + $0x30] sm:$0xff] %vm850_vm4, %v767_v14 }
  0xde   : > { %1933 = vrot.lane.b32.xlu0 %v3440_v13, %s2955_s16 }
  0xdf   : > { %v765_v15 = vpop.permute.xlu1 %764  ;;  %v2045_v16 = vld [vmem:[#allocation3 + $0x18] sm:$0xff] }
  0xe0   : > { %856 = vst.msk [vmem:[#allocation3 + $0x28] sm:$0xff] %vm850_vm4, %v765_v15  ;;  %v2075_v17 = vpack.c.bf16 %v2045_v16, %v2044_v12  ;;  %v956_v19 = vpop.permute.xlu0 %955  ;;  %v3576_v12 = vld [vmem:[#allocation2 + $0xda] sm:$0xff] }
  0xe1   : > { %587 = vrot.lane.b32.xlu1 %v3370_v42, %s2948_s30  ;;  %1048 = vst.msk [vmem:[#allocation3 + $0x20] sm:$0xff] %vm1043_vm5, %v956_v19 }
  0xe2   : > { %2865 = vmatmul.mubr.msk.bf16.vlgmr.msra.gmra.mrb[0].mxu0 %vm2117_vm11, %v2075_v17  ;;  %589 = vrot.lane.b32.xlu0 %v3413_v63, %s2948_s30  ;;  %v3585_v17 = vld [vmem:[#allocation2 + $0xe2] sm:$0xff] }
  0xe3   : > { %v769_v20 = vpop.permute.xlu1 %768 }
  0xe4   : > { %858 = vst.msk [vmem:[#allocation3 + $0x38] sm:$0xff] %vm850_vm4, %v769_v20  ;;  %v960_v21 = vpop.permute.xlu0 %959 }
  0xe5   : > { %1935 = vrot.lane.b32.xlu1 %v3449_v18, %s2955_s16  ;;  %1050 = vst.msk [vmem:[#allocation3 + $0x30] sm:$0xff] %vm1043_vm5, %v960_v21 }
  0xe6   : > { %778 = vrot.lane.b32.xlu0 %v3378_v45, %s2949_s8 }
  0xe7   : > { %v958_v22 = vpop.permute.xlu1 %957 }
  0xe8   : > { %1049 = vst.msk [vmem:[#allocation3 + $0x28] sm:$0xff] %vm1043_vm5, %v958_v22  ;;  %v1149_v23 = vpop.permute.xlu0 %1148 }
  0xe9   : > { %591 = vrot.lane.b32.xlu1 %v3425_v3, %s2948_s30  ;;  %1241 = vst.msk [vmem:[#allocation3 + $0x20] sm:$0xff] %vm1236_vm6, %v1149_v23 }
  0xea   : > { %782 = vrot.lane.b32.xlu0 %v3440_v13, %s2949_s8 }
  0xeb   : > { %v962_v24 = vpop.permute.xlu1 %961 }
  0xec   : > { %1051 = vst.msk [vmem:[#allocation3 + $0x38] sm:$0xff] %vm1043_vm5, %v962_v24  ;;  %v1153_v25 = vpop.permute.xlu0 %1152 }
  0xed   : > { %780 = vrot.lane.b32.xlu1 %v3386_v50, %s2949_s8  ;;  %1243 = vst.msk [vmem:[#allocation3 + $0x30] sm:$0xff] %vm1236_vm6, %v1153_v25  ;;  %v2832_v25 = vld [vmem:[%s3123_s29 + $0x68] sm:$0xff]  }
  0xee   : > { %971 = vrot.lane.b32.xlu0 %v3209_v48, %s2950_s9  ;;  %v2811_v28 = vunpack.c.h.bf16 %v2832_v25 }
  0xef   : > { %v1151_v27 = vpop.permute.xlu1 %1150 }
  0xf0   : > { %1242 = vst.msk [vmem:[#allocation3 + $0x28] sm:$0xff] %vm1236_vm6, %v1151_v27  ;;  %v1342_v30 = vpop.permute.xlu0 %1341  ;;  %v2810_v27 = vunpack.c.l.bf16 %v2832_v25 }
  0xf1   : > { %784 = vrot.lane.b32.xlu1 %v3449_v18, %s2949_s8  ;;  %1434 = vst.msk [vmem:[#allocation3 + $0x20] sm:$0xff] %vm1429_vm7, %v1342_v30 }
  0xf2   : > { %975 = vrot.lane.b32.xlu0 %v3254_v61, %s2950_s9  ;;  %427 = vst.msk [vmem:[#allocation2 + $0x151] sm:$0xff] %vm280_vm0, %v2810_v27  ;;  %428 = vst.msk [vmem:[#allocation2 + $0x159] sm:$0xff] %vm280_vm0, %v2811_v28 }
  0xf3   : > { %v1155_v31 = vpop.permute.xlu1 %1154 }
  0xf4   : > { %1244 = vst.msk [vmem:[#allocation3 + $0x38] sm:$0xff] %vm1236_vm6, %v1155_v31  ;;  %v1346_v48 = vpop.permute.xlu0 %1345 }
  0xf5   : > { %973 = vrot.lane.b32.xlu1 %v3211_v49, %s2950_s9  ;;  %1436 = vst.msk [vmem:[#allocation3 + $0x30] sm:$0xff] %vm1429_vm7, %v1346_v48 }
  0xf6   : > { %1164 = vrot.lane.b32.xlu0 %v3413_v63, %s2951_s10  ;;  %v3549_v63 = vld [vmem:[#allocation2 + $0xd9] sm:$0xff] }
  0xf7   : > { %v1344_v32 = vpop.permute.xlu1 %1343 }
  0xf8   : > { %1435 = vst.msk [vmem:[#allocation3 + $0x28] sm:$0xff] %vm1429_vm7, %v1344_v32  ;;  %v1536_v49 = vpop.permute.xlu0 %1535 }
  0xf9   : > { %977 = vrot.lane.b32.xlu1 %v3256_v62, %s2950_s9  ;;  %1628 = vst.msk [vmem:[#allocation3 + $0x20] sm:$0xff] %vm1623_vm8, %v1536_v49  ;;  %v3624_v48 = vld [vmem:[#allocation2 + $0x150] sm:$0xff]  ;;  %v3626_v32 = vld [vmem:[#allocation2 + $0x158] sm:$0xff] }
  0xfa   : > { %1168 = vrot.lane.b32.xlu0 %v3494_v38, %s2951_s10  ;;  %493 = vst.msk [vmem:[#allocation3 + $0xe0] sm:$0xff] %vm280_vm0, %v3624_v48  ;;  %494 = vst.msk [vmem:[#allocation3 + $0xe8] sm:$0xff] %vm280_vm0, %v3626_v32 }
  0xfb   : > { %v1348_v35 = vpop.permute.xlu1 %1347 }
  0xfc   : > { %1437 = vst.msk [vmem:[#allocation3 + $0x38] sm:$0xff] %vm1429_vm7, %v1348_v35  ;;  %v1540_v42 = vpop.permute.xlu0 %1539  ;;  %v3642_v35 = vld [vmem:[#allocation2 + $0xf9] sm:$0xff] }
  0xfd   : > { %1166 = vrot.lane.b32.xlu1 %v3425_v3, %s2951_s10  ;;  %1630 = vst.msk [vmem:[#allocation3 + $0x30] sm:$0xff] %vm1623_vm8, %v1540_v42 }
  0xfe   : > { %1357 = vrot.lane.b32.xlu0 %v3440_v13, %s2952_s11 }
  0xff   : > { %v1538_v43 = vpop.permute.xlu1 %1537 }
 0x100   : > { %1629 = vst.msk [vmem:[#allocation3 + $0x28] sm:$0xff] %vm1623_vm8, %v1538_v43  ;;  %v1729_v45 = vpop.permute.xlu0 %1728  ;;  %v3650_v43 = vld [vmem:[#allocation2 + $0xf2] sm:$0xff] }
 0x101   : > { %1170 = vrot.lane.b32.xlu1 %v3506_v39, %s2951_s10  ;;  %1821 = vst.msk [vmem:[#allocation3 + $0x20] sm:$0xff] %vm1816_vm9, %v1729_v45 }
 0x102   : > { %1361 = vrot.lane.b32.xlu0 %v3514_v44, %s2952_s11 }
 0x103   : > { %v1542_v46 = vpop.permute.xlu1 %1541 }
 0x104   : > { %1631 = vst.msk [vmem:[#allocation3 + $0x38] sm:$0xff] %vm1623_vm8, %v1542_v46  ;;  %v1733_v50 = vpop.permute.xlu0 %1732  ;;  %v3658_v46 = vld [vmem:[#allocation2 + $0xfa] sm:$0xff] }
 0x105   : > { %1359 = vrot.lane.b32.xlu1 %v3449_v18, %s2952_s11  ;;  %1823 = vst.msk [vmem:[#allocation3 + $0x30] sm:$0xff] %vm1816_vm9, %v1733_v50  ;;  %v2833_v50 = vld [vmem:[%s3123_s29 + $0x70] sm:$0xff]  }
 0x106   : > { %1551 = vrot.lane.b32.xlu0 %v3254_v61, %s2953_s12  ;;  %v2815_v53 = vunpack.c.h.bf16 %v2833_v50 }
 0x107   : > { %v1731_v52 = vpop.permute.xlu1 %1730 }
 0x108   : > { %1822 = vst.msk [vmem:[#allocation3 + $0x28] sm:$0xff] %vm1816_vm9, %v1731_v52  ;;  %v1922_v55 = vpop.permute.xlu0 %1921  ;;  %v2814_v52 = vunpack.c.l.bf16 %v2833_v50 }
 0x109   : > { %1363 = vrot.lane.b32.xlu1 %v3522_v47, %s2952_s11  ;;  %2014 = vst.msk [vmem:[#allocation3 + $0x20] sm:$0xff] %vm2009_vm10, %v1922_v55 }
 0x10a   : > { %1555 = vrot.lane.b32.xlu0 %v3281_v7, %s2953_s12  ;;  %429 = vst.msk [vmem:[#allocation2 + $0x169] sm:$0xff] %vm280_vm0, %v2814_v52  ;;  %430 = vst.msk [vmem:[#allocation2 + $0x171] sm:$0xff] %vm280_vm0, %v2815_v53 }
 0x10b   : > { %v1735_v56 = vpop.permute.xlu1 %1734 }
 0x10c   : > { %1824 = vst.msk [vmem:[#allocation3 + $0x38] sm:$0xff] %vm1816_vm9, %v1735_v56  ;;  %v578_v61 = vpop.permute.xlu0 %577 }
 0x10d   : > { %1553 = vrot.lane.b32.xlu1 %v3256_v62, %s2953_s12  ;;  %666 = vst.msk [vmem:[#allocation3 + $0x40] sm:$0xff] %vm657_vm3, %v578_v61 }
 0x10e   : > { %1744 = vrot.lane.b32.xlu0 %v3494_v38, %s2954_s13 }
 0x10f   : > { %v1924_v57 = vpop.permute.xlu1 %1923 }
 0x110   : > { %2015 = vst.msk [vmem:[#allocation3 + $0x28] sm:$0xff] %vm2009_vm10, %v1924_v57  ;;  %v1926_v62 = vpop.permute.xlu0 %1925  ;;  %v2046_v1 = vld [vmem:[#allocation3 + $0x20] sm:$0xff] }
 0x111   : > { %1557 = vrot.lane.b32.xlu1 %v3283_v8, %s2953_s12  ;;  %2016 = vst.msk [vmem:[#allocation3 + $0x30] sm:$0xff] %vm2009_vm10, %v1926_v62  ;;  %v3679_v61 = vld [vmem:[#allocation2 + $0x168] sm:$0xff]  ;;  %v3681_v57 = vld [vmem:[#allocation2 + $0x170] sm:$0xff] }
 0x112   : > { %1748 = vrot.lane.b32.xlu0 %v3549_v63, %s2954_s13  ;;  %495 = vst.msk [vmem:[#allocation3 + $0xf0] sm:$0xff] %vm280_vm0, %v3679_v61  ;;  %496 = vst.msk [vmem:[#allocation3 + $0xf8] sm:$0xff] %vm280_vm0, %v3681_v57 }
 0x113   : > { %v580_v41 = vpop.permute.xlu1 %579 }
 0x114   : > { %667 = vst.msk [vmem:[#allocation3 + $0x48] sm:$0xff] %vm657_vm3, %v580_v41  ;;  %v582_v3 = vpop.permute.xlu0 %581 }
 0x115   : > { %1746 = vrot.lane.b32.xlu1 %v3506_v39, %s2954_s13  ;;  %668 = vst.msk [vmem:[#allocation3 + $0x50] sm:$0xff] %vm657_vm3, %v582_v3 }
 0x116   : > { %1937 = vrot.lane.b32.xlu0 %v3514_v44, %s2955_s16 }
 0x117   : > { %v1928_v4 = vpop.permute.xlu1 %1927  ;;  %v2047_v5 = vld [vmem:[#allocation3 + $0x28] sm:$0xff] }
 0x118   : > { %2017 = vst.msk [vmem:[#allocation3 + $0x38] sm:$0xff] %vm2009_vm10, %v1928_v4  ;;  %v2076_v6 = vpack.c.bf16 %v2047_v5, %v2046_v1  ;;  %v771_v9 = vpop.permute.xlu0 %770  ;;  %v2048_v11 = vld [vmem:[#allocation3 + $0x30] sm:$0xff]  ;;  %v3697_v1 = vld [vmem:[#allocation2 + $0x111] sm:$0xff] }
 0x119   : > { %1750 = vrot.lane.b32.xlu1 %v3561_v2, %s2954_s13  ;;  %859 = vst.msk [vmem:[#allocation3 + $0x40] sm:$0xff] %vm850_vm4, %v771_v9 }
 0x11a   : > { %2868 = vmatprep.mubr.msk.bf16.mxu0 %vm2117_vm11, %v2076_v6  ;;  %593 = vrot.lane.b32.xlu0 %v3494_v38, %s2948_s30  ;;  %v3630_v38 = vld [vmem:[#allocation2 + $0xf1] sm:$0xff] }
 0x11b   : > { %v584_v10 = vpop.permute.xlu1 %583 }
 0x11c   : > { %669 = vst.msk [vmem:[#allocation3 + $0x58] sm:$0xff] %vm657_vm3, %v584_v10  ;;  %v775_v13 = vpop.permute.xlu0 %774 }
 0x11d   : > { %1939 = vrot.lane.b32.xlu1 %v3522_v47, %s2955_s16  ;;  %861 = vst.msk [vmem:[#allocation3 + $0x50] sm:$0xff] %vm850_vm4, %v775_v13 }
 0x11e   : > { %1941 = vrot.lane.b32.xlu0 %v3576_v12, %s2955_s16 }
 0x11f   : > { %v773_v14 = vpop.permute.xlu1 %772  ;;  %v2049_v15 = vld [vmem:[#allocation3 + $0x38] sm:$0xff] }
 0x120   : > { %860 = vst.msk [vmem:[#allocation3 + $0x48] sm:$0xff] %vm850_vm4, %v773_v14  ;;  %v2077_v16 = vpack.c.bf16 %v2049_v15, %v2048_v11  ;;  %v964_v18 = vpop.permute.xlu0 %963  ;;  %v3712_v11 = vld [vmem:[#allocation2 + $0x10a] sm:$0xff] }
 0x121   : > { %595 = vrot.lane.b32.xlu1 %v3506_v39, %s2948_s30  ;;  %1052 = vst.msk [vmem:[#allocation3 + $0x40] sm:$0xff] %vm1043_vm5, %v964_v18 }
 0x122   : > { %2869 = vmatmul.mubr.msk.bf16.gmra.mrb[4].mxu0 %vm2117_vm11, %v2077_v16  ;;  %597 = vrot.lane.b32.xlu0 %v3549_v63, %s2948_s30  ;;  %v1868_v16 = vld [vmem:[#allocation2 + $0x112] sm:$0xff] }
 0x123   : > { %v777_v19 = vpop.permute.xlu1 %776 }
 0x124   : > { %862 = vst.msk [vmem:[#allocation3 + $0x58] sm:$0xff] %vm850_vm4, %v777_v19  ;;  %v968_v20 = vpop.permute.xlu0 %967 }
 0x125   : > { %1943 = vrot.lane.b32.xlu1 %v3585_v17, %s2955_s16  ;;  %1054 = vst.msk [vmem:[#allocation3 + $0x50] sm:$0xff] %vm1043_vm5, %v968_v20 }
 0x126   : > { %786 = vrot.lane.b32.xlu0 %v3514_v44, %s2949_s8 }
 0x127   : > { %v966_v21 = vpop.permute.xlu1 %965 }
 0x128   : > { %1053 = vst.msk [vmem:[#allocation3 + $0x48] sm:$0xff] %vm1043_vm5, %v966_v21  ;;  %v1157_v22 = vpop.permute.xlu0 %1156 }
 0x129   : > { %599 = vrot.lane.b32.xlu1 %v3561_v2, %s2948_s30  ;;  %1245 = vst.msk [vmem:[#allocation3 + $0x40] sm:$0xff] %vm1236_vm6, %v1157_v22 }
 0x12a   : > { %790 = vrot.lane.b32.xlu0 %v3576_v12, %s2949_s8 }
 0x12b   : > { %v970_v23 = vpop.permute.xlu1 %969 }
 0x12c   : > { %1055 = vst.msk [vmem:[#allocation3 + $0x58] sm:$0xff] %vm1043_vm5, %v970_v23  ;;  %v1161_v24 = vpop.permute.xlu0 %1160 }
 0x12d   : > { %788 = vrot.lane.b32.xlu1 %v3522_v47, %s2949_s8  ;;  %1247 = vst.msk [vmem:[#allocation3 + $0x50] sm:$0xff] %vm1236_vm6, %v1161_v24  ;;  %v2834_v24 = vld [vmem:[%s3123_s29 + $0x78] sm:$0xff]  }
 0x12e   : > { %979 = vrot.lane.b32.xlu0 %v3281_v7, %s2950_s9  ;;  %v2819_v27 = vunpack.c.h.bf16 %v2834_v24 }
 0x12f   : > { %v1159_v26 = vpop.permute.xlu1 %1158 }
 0x130   : > { %1246 = vst.msk [vmem:[#allocation3 + $0x48] sm:$0xff] %vm1236_vm6, %v1159_v26  ;;  %v1350_v29 = vpop.permute.xlu0 %1349  ;;  %v2818_v26 = vunpack.c.l.bf16 %v2834_v24 }
 0x131   : > { %792 = vrot.lane.b32.xlu1 %v3585_v17, %s2949_s8  ;;  %1438 = vst.msk [vmem:[#allocation3 + $0x40] sm:$0xff] %vm1429_vm7, %v1350_v29 }
 0x132   : > { %983 = vrot.lane.b32.xlu0 %v3352_v36, %s2950_s9  ;;  %431 = vst.msk [vmem:[#allocation2 + $0x181] sm:$0xff] %vm280_vm0, %v2818_v26  ;;  %432 = vst.msk [vmem:[#allocation2 + $0x189] sm:$0xff] %vm280_vm0, %v2819_v27  ;;  %v3875_v26 = vld [vmem:[#allocation2 + $0x159] sm:$0xff] }
 0x133   : > { %v1163_v30 = vpop.permute.xlu1 %1162 }
 0x134   : > { %1248 = vst.msk [vmem:[#allocation3 + $0x58] sm:$0xff] %vm1236_vm6, %v1163_v30  ;;  %v1354_v7 = vpop.permute.xlu0 %1353 }
 0x135   : > { %981 = vrot.lane.b32.xlu1 %v3283_v8, %s2950_s9  ;;  %1440 = vst.msk [vmem:[#allocation3 + $0x50] sm:$0xff] %vm1429_vm7, %v1354_v7  ;;  %v1098_v7 = vld [vmem:[#allocation2 + $0x121] sm:$0xff] }
 0x136   : > { %1172 = vrot.lane.b32.xlu0 %v3549_v63, %s2951_s10  ;;  %v3685_v63 = vld [vmem:[#allocation2 + $0x109] sm:$0xff] }
 0x137   : > { %v1352_v31 = vpop.permute.xlu1 %1351 }
 0x138   : > { %1439 = vst.msk [vmem:[#allocation3 + $0x48] sm:$0xff] %vm1429_vm7, %v1352_v31  ;;  %v1544_v8 = vpop.permute.xlu0 %1543 }
 0x139   : > { %985 = vrot.lane.b32.xlu1 %v3354_v37, %s2950_s9  ;;  %1632 = vst.msk [vmem:[#allocation3 + $0x40] sm:$0xff] %vm1623_vm8, %v1544_v8 }
 0x13a   : > { %1176 = vrot.lane.b32.xlu0 %v3630_v38, %s2951_s10 }
 0x13b   : > { %v1356_v49 = vpop.permute.xlu1 %1355 }
 0x13c   : > { %1441 = vst.msk [vmem:[#allocation3 + $0x58] sm:$0xff] %vm1429_vm7, %v1356_v49  ;;  %v1548_v39 = vpop.permute.xlu0 %1547 }
 0x13d   : > { %1174 = vrot.lane.b32.xlu1 %v3561_v2, %s2951_s10  ;;  %1634 = vst.msk [vmem:[#allocation3 + $0x50] sm:$0xff] %vm1623_vm8, %v1548_v39 }
 0x13e   : > { %1365 = vrot.lane.b32.xlu0 %v3576_v12, %s2952_s11 }
 0x13f   : > { %v1546_v42 = vpop.permute.xlu1 %1545 }
 0x140   : > { %1633 = vst.msk [vmem:[#allocation3 + $0x48] sm:$0xff] %vm1623_vm8, %v1546_v42  ;;  %v1737_v44 = vpop.permute.xlu0 %1736 }
 0x141   : > { %1178 = vrot.lane.b32.xlu1 %v3642_v35, %s2951_s10  ;;  %1825 = vst.msk [vmem:[#allocation3 + $0x40] sm:$0xff] %vm1816_vm9, %v1737_v44 }
 0x142   : > { %1369 = vrot.lane.b32.xlu0 %v3650_v43, %s2952_s11 }
 0x143   : > { %v1550_v45 = vpop.permute.xlu1 %1549 }
 0x144   : > { %1635 = vst.msk [vmem:[#allocation3 + $0x58] sm:$0xff] %vm1623_vm8, %v1550_v45  ;;  %v1741_v47 = vpop.permute.xlu0 %1740 }
 0x145   : > { %1367 = vrot.lane.b32.xlu1 %v3585_v17, %s2952_s11  ;;  %1827 = vst.msk [vmem:[#allocation3 + $0x50] sm:$0xff] %vm1816_vm9, %v1741_v47 }
 0x146   : > { %1559 = vrot.lane.b32.xlu0 %v3352_v36, %s2953_s12 }
 0x147   : > { %v1739_v51 = vpop.permute.xlu1 %1738 }
 0x148   : > { %1826 = vst.msk [vmem:[#allocation3 + $0x48] sm:$0xff] %vm1816_vm9, %v1739_v51  ;;  %v1930_v54 = vpop.permute.xlu0 %1929 }
 0x149   : > { %1371 = vrot.lane.b32.xlu1 %v3658_v46, %s2952_s11  ;;  %2018 = vst.msk [vmem:[#allocation3 + $0x40] sm:$0xff] %vm2009_vm10, %v1930_v54  ;;  %v3805_v54 = vld [vmem:[#allocation2 + $0x141] sm:$0xff] }
 0x14a   : > { %1563 = vrot.lane.b32.xlu0 %v3407_v59, %s2953_s12 }
 0x14b   : > { %v1743_v55 = vpop.permute.xlu1 %1742 }
 0x14c   : > { %1828 = vst.msk [vmem:[#allocation3 + $0x58] sm:$0xff] %vm1816_vm9, %v1743_v55  ;;  %v586_v36 = vpop.permute.xlu0 %585 }
 0x14d   : > { %1561 = vrot.lane.b32.xlu1 %v3354_v37, %s2953_s12  ;;  %670 = vst.msk [vmem:[#allocation3 + $0x60] sm:$0xff] %vm657_vm3, %v586_v36 }
 0x14e   : > { %1752 = vrot.lane.b32.xlu0 %v3630_v38, %s2954_s13 }
 0x14f   : > { %v1932_v56 = vpop.permute.xlu1 %1931 }
 0x150   : > { %2019 = vst.msk [vmem:[#allocation3 + $0x48] sm:$0xff] %vm2009_vm10, %v1932_v56  ;;  %v1934_v37 = vpop.permute.xlu0 %1933  ;;  %v2050_v41 = vld [vmem:[#allocation3 + $0x40] sm:$0xff] }
 0x151   : > { %1565 = vrot.lane.b32.xlu1 %v3409_v60, %s2953_s12  ;;  %2020 = vst.msk [vmem:[#allocation3 + $0x50] sm:$0xff] %vm2009_vm10, %v1934_v37 }
 0x152   : > { %1756 = vrot.lane.b32.xlu0 %v3685_v63, %s2954_s13 }
 0x153   : > { %v588_v62 = vpop.permute.xlu1 %587 }
 0x154   : > { %671 = vst.msk [vmem:[#allocation3 + $0x68] sm:$0xff] %vm657_vm3, %v588_v62  ;;  %v590_v2 = vpop.permute.xlu0 %589 }
 0x155   : > { %1754 = vrot.lane.b32.xlu1 %v3642_v35, %s2954_s13  ;;  %672 = vst.msk [vmem:[#allocation3 + $0x70] sm:$0xff] %vm657_vm3, %v590_v2 }
 0x156   : > { %1945 = vrot.lane.b32.xlu0 %v3650_v43, %s2955_s16 }
 0x157   : > { %v1936_v3 = vpop.permute.xlu1 %1935  ;;  %v2051_v4 = vld [vmem:[#allocation3 + $0x48] sm:$0xff] }
 0x158   : > { %2021 = vst.msk [vmem:[#allocation3 + $0x58] sm:$0xff] %vm2009_vm10, %v1936_v3  ;;  %v2078_v5 = vpack.c.bf16 %v2051_v4, %v2050_v41  ;;  %v779_v6 = vpop.permute.xlu0 %778  ;;  %v2052_v10 = vld [vmem:[#allocation3 + $0x50] sm:$0xff] }
 0x159   : > { %1758 = vrot.lane.b32.xlu1 %v3697_v1, %s2954_s13  ;;  %863 = vst.msk [vmem:[#allocation3 + $0x60] sm:$0xff] %vm850_vm4, %v779_v6  ;;  %v1872_v6 = vld [vmem:[#allocation2 + $0x142] sm:$0xff] }
 0x15a   : > { %2872 = vmatprep.mubr.msk.bf16.mxu0 %vm2117_vm11, %v2078_v5  ;;  %601 = vrot.lane.b32.xlu0 %v3630_v38, %s2948_s30 }
 0x15b   : > { %v592_v9 = vpop.permute.xlu1 %591 }
 0x15c   : > { %673 = vst.msk [vmem:[#allocation3 + $0x78] sm:$0xff] %vm657_vm3, %v592_v9  ;;  %v783_v12 = vpop.permute.xlu0 %782 }
 0x15d   : > { %1947 = vrot.lane.b32.xlu1 %v3658_v46, %s2955_s16  ;;  %865 = vst.msk [vmem:[#allocation3 + $0x70] sm:$0xff] %vm850_vm4, %v783_v12 }
 0x15e   : > { %1949 = vrot.lane.b32.xlu0 %v3712_v11, %s2955_s16 }
 0x15f   : > { %v781_v13 = vpop.permute.xlu1 %780  ;;  %v2053_v14 = vld [vmem:[#allocation3 + $0x58] sm:$0xff] }
 0x160   : > { %864 = vst.msk [vmem:[#allocation3 + $0x68] sm:$0xff] %vm850_vm4, %v781_v13  ;;  %v2079_v15 = vpack.c.bf16 %v2053_v14, %v2052_v10  ;;  %v972_v17 = vpop.permute.xlu0 %971 }
 0x161   : > { %603 = vrot.lane.b32.xlu1 %v3642_v35, %s2948_s30  ;;  %1056 = vst.msk [vmem:[#allocation3 + $0x60] sm:$0xff] %vm1043_vm5, %v972_v17  ;;  %v3771_v35 = vld [vmem:[#allocation2 + $0x122] sm:$0xff] }
 0x162   : > { %2873 = vmatmul.mubr.msk.bf16.gmra.mrb[8].mxu0 %vm2117_vm11, %v2079_v15  ;;  %605 = vrot.lane.b32.xlu0 %v3685_v63, %s2948_s30 }
 0x163   : > { %v785_v18 = vpop.permute.xlu1 %784 }
 0x164   : > { %866 = vst.msk [vmem:[#allocation3 + $0x78] sm:$0xff] %vm850_vm4, %v785_v18  ;;  %v976_v19 = vpop.permute.xlu0 %975 }
 0x165   : > { %1951 = vrot.lane.b32.xlu1 %v1868_v16, %s2955_s16  ;;  %1058 = vst.msk [vmem:[#allocation3 + $0x70] sm:$0xff] %vm1043_vm5, %v976_v19 }
 0x166   : > { %794 = vrot.lane.b32.xlu0 %v3650_v43, %s2949_s8  ;;  %v3778_v43 = vld [vmem:[#allocation2 + $0x12a] sm:$0xff] }
 0x167   : > { %v974_v20 = vpop.permute.xlu1 %973 }
 0x168   : > { %1057 = vst.msk [vmem:[#allocation3 + $0x68] sm:$0xff] %vm1043_vm5, %v974_v20  ;;  %v1165_v21 = vpop.permute.xlu0 %1164 }
 0x169   : > { %607 = vrot.lane.b32.xlu1 %v3697_v1, %s2948_s30  ;;  %1249 = vst.msk [vmem:[#allocation3 + $0x60] sm:$0xff] %vm1236_vm6, %v1165_v21 }
 0x16a   : > { %798 = vrot.lane.b32.xlu0 %v3712_v11, %s2949_s8 }
 0x16b   : > { %v978_v22 = vpop.permute.xlu1 %977 }
 0x16c   : > { %1059 = vst.msk [vmem:[#allocation3 + $0x78] sm:$0xff] %vm1043_vm5, %v978_v22  ;;  %v1169_v23 = vpop.permute.xlu0 %1168 }
 0x16d   : > { %796 = vrot.lane.b32.xlu1 %v3658_v46, %s2949_s8  ;;  %1251 = vst.msk [vmem:[#allocation3 + $0x70] sm:$0xff] %vm1236_vm6, %v1169_v23 }
 0x16e   : > { %987 = vrot.lane.b32.xlu0 %v3407_v59, %s2950_s9 }
 0x16f   : > { %v1167_v25 = vpop.permute.xlu1 %1166 }
 0x170   : > { %1250 = vst.msk [vmem:[#allocation3 + $0x68] sm:$0xff] %vm1236_vm6, %v1167_v25  ;;  %v1358_v28 = vpop.permute.xlu0 %1357 }
 0x171   : > { %800 = vrot.lane.b32.xlu1 %v1868_v16, %s2949_s8  ;;  %1442 = vst.msk [vmem:[#allocation3 + $0x60] sm:$0xff] %vm1429_vm7, %v1358_v28 }
 0x172   : > { %991 = vrot.lane.b32.xlu0 %v3488_v33, %s2950_s9 }
 0x173   : > { %v1171_v29 = vpop.permute.xlu1 %1170 }
 0x174   : > { %1252 = vst.msk [vmem:[#allocation3 + $0x78] sm:$0xff] %vm1236_vm6, %v1171_v29  ;;  %v1362_v30 = vpop.permute.xlu0 %1361  ;;  %v3883_v29 = vld [vmem:[#allocation2 + $0x152] sm:$0xff] }
 0x175   : > { %989 = vrot.lane.b32.xlu1 %v3409_v60, %s2950_s9  ;;  %1444 = vst.msk [vmem:[#allocation3 + $0x70] sm:$0xff] %vm1429_vm7, %v1362_v30  ;;  %v3763_v60 = vld [vmem:[#allocation2 + $0x129] sm:$0xff] }
 0x176   : > { %1180 = vrot.lane.b32.xlu0 %v3685_v63, %s2951_s10 }
 0x177   : > { %v1360_v59 = vpop.permute.xlu1 %1359 }
 0x178   : > { %1443 = vst.msk [vmem:[#allocation3 + $0x68] sm:$0xff] %vm1429_vm7, %v1360_v59  ;;  %v1552_v31 = vpop.permute.xlu0 %1551 }
 0x179   : > { %993 = vrot.lane.b32.xlu1 %v3490_v34, %s2950_s9  ;;  %1636 = vst.msk [vmem:[#allocation3 + $0x60] sm:$0xff] %vm1623_vm8, %v1552_v31 }
 0x17a   : > { %1184 = vrot.lane.b32.xlu0 %v1098_v7, %s2951_s10 }
 0x17b   : > { %v1364_v38 = vpop.permute.xlu1 %1363 }
 0x17c   : > { %1445 = vst.msk [vmem:[#allocation3 + $0x78] sm:$0xff] %vm1429_vm7, %v1364_v38  ;;  %v1556_v8 = vpop.permute.xlu0 %1555 }
 0x17d   : > { %1182 = vrot.lane.b32.xlu1 %v3697_v1, %s2951_s10  ;;  %1638 = vst.msk [vmem:[#allocation3 + $0x70] sm:$0xff] %vm1623_vm8, %v1556_v8  ;;  %v3819_v1 = vld [vmem:[#allocation2 + $0x13a] sm:$0xff] }
 0x17e   : > { %1373 = vrot.lane.b32.xlu0 %v3712_v11, %s2952_s11 }
 0x17f   : > { %v1554_v49 = vpop.permute.xlu1 %1553 }
 0x180   : > { %1637 = vst.msk [vmem:[#allocation3 + $0x68] sm:$0xff] %vm1623_vm8, %v1554_v49  ;;  %v1745_v39 = vpop.permute.xlu0 %1744 }
 0x181   : > { %1186 = vrot.lane.b32.xlu1 %v3763_v60, %s2951_s10  ;;  %1829 = vst.msk [vmem:[#allocation3 + $0x60] sm:$0xff] %vm1816_vm9, %v1745_v39 }
 0x182   : > { %1377 = vrot.lane.b32.xlu0 %v3771_v35, %s2952_s11 }
 0x183   : > { %v1558_v42 = vpop.permute.xlu1 %1557 }
 0x184   : > { %1639 = vst.msk [vmem:[#allocation3 + $0x78] sm:$0xff] %vm1623_vm8, %v1558_v42  ;;  %v1749_v44 = vpop.permute.xlu0 %1748 }
 0x185   : > { %1375 = vrot.lane.b32.xlu1 %v1868_v16, %s2952_s11  ;;  %1831 = vst.msk [vmem:[#allocation3 + $0x70] sm:$0xff] %vm1816_vm9, %v1749_v44 }
 0x186   : > { %1567 = vrot.lane.b32.xlu0 %v3488_v33, %s2953_s12  ;;  %v3797_v33 = vld [vmem:[#allocation2 + $0x139] sm:$0xff] }
 0x187   : > { %v1747_v45 = vpop.permute.xlu1 %1746 }
 0x188   : > { %1830 = vst.msk [vmem:[#allocation3 + $0x68] sm:$0xff] %vm1816_vm9, %v1747_v45  ;;  %v1938_v46 = vpop.permute.xlu0 %1937 }
 0x189   : > { %1379 = vrot.lane.b32.xlu1 %v3778_v43, %s2952_s11  ;;  %2022 = vst.msk [vmem:[#allocation3 + $0x60] sm:$0xff] %vm2009_vm10, %v1938_v46 }
 0x18a   : > { %1571 = vrot.lane.b32.xlu0 %v3543_v40, %s2953_s12 }
 0x18b   : > { %v1751_v47 = vpop.permute.xlu1 %1750 }
 0x18c   : > { %1832 = vst.msk [vmem:[#allocation3 + $0x78] sm:$0xff] %vm1816_vm9, %v1751_v47  ;;  %v594_v50 = vpop.permute.xlu0 %593 }
 0x18d   : > { %1569 = vrot.lane.b32.xlu1 %v3490_v34, %s2953_s12  ;;  %674 = vst.msk [vmem:[#allocation3 + $0x80] sm:$0xff] %vm657_vm3, %v594_v50 }
 0x18e   : > { %1760 = vrot.lane.b32.xlu0 %v1098_v7, %s2954_s13 }
 0x18f   : > { %v1940_v51 = vpop.permute.xlu1 %1939 }
 0x190   : > { %2023 = vst.msk [vmem:[#allocation3 + $0x68] sm:$0xff] %vm2009_vm10, %v1940_v51  ;;  %v1942_v52 = vpop.permute.xlu0 %1941  ;;  %v2054_v34 = vld [vmem:[#allocation3 + $0x60] sm:$0xff] }
 0x191   : > { %1573 = vrot.lane.b32.xlu1 %v3545_v58, %s2953_s12  ;;  %2024 = vst.msk [vmem:[#allocation3 + $0x70] sm:$0xff] %vm2009_vm10, %v1942_v52  ;;  %v3931_v52 = vld [vmem:[#allocation2 + $0x16a] sm:$0xff] }
 0x192   : > { %1764 = vrot.lane.b32.xlu0 %v3797_v33, %s2954_s13 }
 0x193   : > { %v596_v53 = vpop.permute.xlu1 %595 }
 0x194   : > { %675 = vst.msk [vmem:[#allocation3 + $0x88] sm:$0xff] %vm657_vm3, %v596_v53  ;;  %v598_v55 = vpop.permute.xlu0 %597 }
 0x195   : > { %1762 = vrot.lane.b32.xlu1 %v3763_v60, %s2954_s13  ;;  %676 = vst.msk [vmem:[#allocation3 + $0x90] sm:$0xff] %vm657_vm3, %v598_v55 }
 0x196   : > { %1953 = vrot.lane.b32.xlu0 %v3771_v35, %s2955_s16 }
 0x197   : > { %v1944_v36 = vpop.permute.xlu1 %1943  ;;  %v2055_v56 = vld [vmem:[#allocation3 + $0x68] sm:$0xff] }
 0x198   : > { %2025 = vst.msk [vmem:[#allocation3 + $0x78] sm:$0xff] %vm2009_vm10, %v1944_v36  ;;  %v2080_v63 = vpack.c.bf16 %v2055_v56, %v2054_v34  ;;  %v787_v37 = vpop.permute.xlu0 %786  ;;  %v2056_v41 = vld [vmem:[#allocation3 + $0x70] sm:$0xff]  ;;  %v1876_v36 = vld [vmem:[#allocation2 + $0x172] sm:$0xff] }
 0x199   : > { %1766 = vrot.lane.b32.xlu1 %v3805_v54, %s2954_s13  ;;  %867 = vst.msk [vmem:[#allocation3 + $0x80] sm:$0xff] %vm850_vm4, %v787_v37 }
 0x19a   : > { %2876 = vmatprep.mubr.msk.bf16.mxu0 %vm2117_vm11, %v2080_v63  ;;  %609 = vrot.lane.b32.xlu0 %v1098_v7, %s2948_s30  ;;  %v3890_v7 = vld [vmem:[#allocation2 + $0x15a] sm:$0xff] }
 0x19b   : > { %v600_v62 = vpop.permute.xlu1 %599 }
 0x19c   : > { %677 = vst.msk [vmem:[#allocation3 + $0x98] sm:$0xff] %vm657_vm3, %v600_v62  ;;  %v791_v2 = vpop.permute.xlu0 %790 }
 0x19d   : > { %1955 = vrot.lane.b32.xlu1 %v3778_v43, %s2955_s16  ;;  %869 = vst.msk [vmem:[#allocation3 + $0x90] sm:$0xff] %vm850_vm4, %v791_v2 }
 0x19e   : > { %1957 = vrot.lane.b32.xlu0 %v3819_v1, %s2955_s16 }
 0x19f   : > { %v789_v3 = vpop.permute.xlu1 %788  ;;  %v2057_v4 = vld [vmem:[#allocation3 + $0x78] sm:$0xff] }
 0x1a0   : > { %868 = vst.msk [vmem:[#allocation3 + $0x88] sm:$0xff] %vm850_vm4, %v789_v3  ;;  %v2081_v5 = vpack.c.bf16 %v2057_v4, %v2056_v41  ;;  %v980_v9 = vpop.permute.xlu0 %979  ;;  %v913_v4 = vld [vmem:[#allocation2 + $0x180] sm:$0xff] }
 0x1a1   : > { %611 = vrot.lane.b32.xlu1 %v3763_v60, %s2948_s30  ;;  %1060 = vst.msk [vmem:[#allocation3 + $0x80] sm:$0xff] %vm1043_vm5, %v980_v9 }
 0x1a2   : > { %2877 = vmatmul.mubr.msk.bf16.gmra.mrb[12].mxu0 %vm2117_vm11, %v2081_v5  ;;  %613 = vrot.lane.b32.xlu0 %v3797_v33, %s2948_s30 }
 0x1a3   : > { %v793_v10 = vpop.permute.xlu1 %792 }
 0x1a4   : > { %870 = vst.msk [vmem:[#allocation3 + $0x98] sm:$0xff] %vm850_vm4, %v793_v10  ;;  %v984_v11 = vpop.permute.xlu0 %983 }
 0x1a5   : > { %1959 = vrot.lane.b32.xlu1 %v1872_v6, %s2955_s16  ;;  %1062 = vst.msk [vmem:[#allocation3 + $0x90] sm:$0xff] %vm1043_vm5, %v984_v11  ;;  %v914_v11 = vld [vmem:[#allocation2 + $0x188] sm:$0xff] }
 0x1a6   : > { %802 = vrot.lane.b32.xlu0 %v3771_v35, %s2949_s8 }
 0x1a7   : > { %v982_v12 = vpop.permute.xlu1 %981 }
 0x1a8   : > { %1061 = vst.msk [vmem:[#allocation3 + $0x88] sm:$0xff] %vm1043_vm5, %v982_v12  ;;  %v1173_v13 = vpop.permute.xlu0 %1172 }
 0x1a9   : > { %615 = vrot.lane.b32.xlu1 %v3805_v54, %s2948_s30  ;;  %1253 = vst.msk [vmem:[#allocation3 + $0x80] sm:$0xff] %vm1236_vm6, %v1173_v13 }
 0x1aa   : > { %806 = vrot.lane.b32.xlu0 %v3819_v1, %s2949_s8 }
 0x1ab   : > { %v986_v14 = vpop.permute.xlu1 %985 }
 0x1ac   : > { %1063 = vst.msk [vmem:[#allocation3 + $0x98] sm:$0xff] %vm1043_vm5, %v986_v14  ;;  %v1177_v15 = vpop.permute.xlu0 %1176 }
 0x1ad   : > { %804 = vrot.lane.b32.xlu1 %v3778_v43, %s2949_s8  ;;  %1255 = vst.msk [vmem:[#allocation3 + $0x90] sm:$0xff] %vm1236_vm6, %v1177_v15  ;;  %v3917_v43 = vld [vmem:[#allocation2 + $0x171] sm:$0xff] }
 0x1ae   : > { %995 = vrot.lane.b32.xlu0 %v3543_v40, %s2950_s9 }
 0x1af   : > { %v1175_v16 = vpop.permute.xlu1 %1174 }
 0x1b0   : > { %1254 = vst.msk [vmem:[#allocation3 + $0x88] sm:$0xff] %vm1236_vm6, %v1175_v16  ;;  %v1366_v17 = vpop.permute.xlu0 %1365 }
 0x1b1   : > { %808 = vrot.lane.b32.xlu1 %v1872_v6, %s2949_s8  ;;  %1446 = vst.msk [vmem:[#allocation3 + $0x80] sm:$0xff] %vm1429_vm7, %v1366_v17  ;;  %v1107_v17 = vld [vmem:[#allocation2 + $0x189] sm:$0xff] }
 0x1b2   : > { %999 = vrot.lane.b32.xlu0 %v3624_v48, %s2950_s9 }
 0x1b3   : > { %v1179_v18 = vpop.permute.xlu1 %1178 }
 0x1b4   : > { %1256 = vst.msk [vmem:[#allocation3 + $0x98] sm:$0xff] %vm1236_vm6, %v1179_v18  ;;  %v1370_v21 = vpop.permute.xlu0 %1369 }
 0x1b5   : > { %997 = vrot.lane.b32.xlu1 %v3545_v58, %s2950_s9  ;;  %v3856_v19 = vpop.f32.mrb[0].mxu0  ;;  %1448 = vst.msk [vmem:[#allocation3 + $0x90] sm:$0xff] %vm1429_vm7, %v1370_v21  ;;  %v1102_v58 = vld [vmem:[#allocation2 + $0x151] sm:$0xff] }
 0x1b6   : > { %v3858_v20 = vpop.f32.mrb[1].mxu0  ;;  %1188 = vrot.lane.b32.xlu0 %v3797_v33, %s2951_s10 }
 0x1b7   : > { %v1368_v40 = vpop.permute.xlu1 %1367  ;;  %v3860_v22 = vpop.f32.mrb[2].mxu0 }
 0x1b8   : > { %1447 = vst.msk [vmem:[#allocation3 + $0x88] sm:$0xff] %vm1429_vm7, %v1368_v40  ;;  %v3864_v23 = vpop.f32.mrb[3].mxu0  ;;  %v1560_v24 = vpop.permute.xlu0 %1559  ;;  %v1299_v40 = vld [vmem:[#allocation2 + $0x182] sm:$0xff] }
 0x1b9   : > { %1001 = vrot.lane.b32.xlu1 %v3626_v32, %s2950_s9  ;;  %1640 = vst.msk [vmem:[#allocation3 + $0x80] sm:$0xff] %vm1623_vm8, %v1560_v24 }
 0x1ba   : > { %1192 = vrot.lane.b32.xlu0 %v1102_v58, %s2951_s10 }
 0x1bb   : > { %v1372_v25 = vpop.permute.xlu1 %1371 }
 0x1bc   : > { %1449 = vst.msk [vmem:[#allocation3 + $0x98] sm:$0xff] %vm1429_vm7, %v1372_v25  ;;  %v1564_v27 = vpop.permute.xlu0 %1563  ;;  %v1300_v25 = vld [vmem:[#allocation2 + $0x18a] sm:$0xff] }
 0x1bd   : > { %1190 = vrot.lane.b32.xlu1 %v3805_v54, %s2951_s10  ;;  %1642 = vst.msk [vmem:[#allocation3 + $0x90] sm:$0xff] %vm1623_vm8, %v1564_v27 }
 0x1be   : > { %1381 = vrot.lane.b32.xlu0 %v3819_v1, %s2952_s11 }
 0x1bf   : > { %v1562_v28 = vpop.permute.xlu1 %1561 }
 0x1c0   : > { %1641 = vst.msk [vmem:[#allocation3 + $0x88] sm:$0xff] %vm1623_vm8, %v1562_v28  ;;  %v1753_v30 = vpop.permute.xlu0 %1752  ;;  %v1493_v28 = vld [vmem:[#allocation2 + $0x198] sm:$0xff] }
 0x1c1   : > { %1194 = vrot.lane.b32.xlu1 %v3875_v26, %s2951_s10  ;;  %1833 = vst.msk [vmem:[#allocation3 + $0x80] sm:$0xff] %vm1816_vm9, %v1753_v30 }
 0x1c2   : > { %1385 = vrot.lane.b32.xlu0 %v3883_v29, %s2952_s11 }
 0x1c3   : > { %v1566_v59 = vpop.permute.xlu1 %1565 }
 0x1c4   : > { %1643 = vst.msk [vmem:[#allocation3 + $0x98] sm:$0xff] %vm1623_vm8, %v1566_v59  ;;  %v1757_v31 = vpop.permute.xlu0 %1756  ;;  %v1494_v59 = vld [vmem:[#allocation2 + $0x1a0] sm:$0xff] }
 0x1c5   : > { %1383 = vrot.lane.b32.xlu1 %v1872_v6, %s2952_s11  ;;  %1835 = vst.msk [vmem:[#allocation3 + $0x90] sm:$0xff] %vm1816_vm9, %v1757_v31 }
 0x1c6   : > { %1575 = vrot.lane.b32.xlu0 %v3624_v48, %s2953_s12  ;;  %v3909_v48 = vld [vmem:[#allocation2 + $0x169] sm:$0xff] }
 0x1c7   : > { %v1755_v38 = vpop.permute.xlu1 %1754 }
 0x1c8   : > { %1834 = vst.msk [vmem:[#allocation3 + $0x88] sm:$0xff] %vm1816_vm9, %v1755_v38  ;;  %v1946_v60 = vpop.permute.xlu0 %1945  ;;  %v1686_v38 = vld [vmem:[#allocation2 + $0x199] sm:$0xff] }
 0x1c9   : > { %1387 = vrot.lane.b32.xlu1 %v3890_v7, %s2952_s11  ;;  %2026 = vst.msk [vmem:[#allocation3 + $0x80] sm:$0xff] %vm2009_vm10, %v1946_v60 }
 0x1ca   : > { %1579 = vrot.lane.b32.xlu0 %v3679_v61, %s2953_s12 }
 0x1cb   : > { %v1759_v8 = vpop.permute.xlu1 %1758 }
 0x1cc   : > { %1836 = vst.msk [vmem:[#allocation3 + $0x98] sm:$0xff] %vm1816_vm9, %v1759_v8  ;;  %v602_v49 = vpop.permute.xlu0 %601 }
 0x1cd   : > { %1577 = vrot.lane.b32.xlu1 %v3626_v32, %s2953_s12  ;;  %678 = vst.msk [vmem:[#allocation3 + $0xa0] sm:$0xff] %vm657_vm3, %v602_v49 }
 0x1ce   : > { %1768 = vrot.lane.b32.xlu0 %v1102_v58, %s2954_s13 }
 0x1cf   : > { %v1948_v35 = vpop.permute.xlu1 %1947 }
 0x1d0   : > { %2027 = vst.msk [vmem:[#allocation3 + $0x88] sm:$0xff] %vm2009_vm10, %v1948_v35  ;;  %v1950_v39 = vpop.permute.xlu0 %1949  ;;  %v2058_v32 = vld [vmem:[#allocation3 + $0x80] sm:$0xff]  ;;  %v1687_v35 = vld [vmem:[#allocation2 + $0x1a1] sm:$0xff] }
 0x1d1   : > { %1581 = vrot.lane.b32.xlu1 %v3681_v57, %s2953_s12  ;;  %2028 = vst.msk [vmem:[#allocation3 + $0x90] sm:$0xff] %vm2009_vm10, %v1950_v39 }
 0x1d2   : > { %1772 = vrot.lane.b32.xlu0 %v3909_v48, %s2954_s13 }
 0x1d3   : > { %v604_v42 = vpop.permute.xlu1 %603 }
 0x1d4   : > { %679 = vst.msk [vmem:[#allocation3 + $0xa8] sm:$0xff] %vm657_vm3, %v604_v42  ;;  %v606_v44 = vpop.permute.xlu0 %605 }
 0x1d5   : > { %1770 = vrot.lane.b32.xlu1 %v3875_v26, %s2954_s13  ;;  %680 = vst.msk [vmem:[#allocation3 + $0xb0] sm:$0xff] %vm657_vm3, %v606_v44 }
 0x1d6   : > { %1961 = vrot.lane.b32.xlu0 %v3883_v29, %s2955_s16 }
 0x1d7   : > { %v1952_v45 = vpop.permute.xlu1 %1951  ;;  %v2059_v46 = vld [vmem:[#allocation3 + $0x88] sm:$0xff] }
 0x1d8   : > { %2029 = vst.msk [vmem:[#allocation3 + $0x98] sm:$0xff] %vm2009_vm10, %v1952_v45  ;;  %v2082_v47 = vpack.c.bf16 %v2059_v46, %v2058_v32  ;;  %v795_v50 = vpop.permute.xlu0 %794  ;;  %v2060_v33 = vld [vmem:[#allocation3 + $0x90] sm:$0xff] }
 0x1d9   : > { %1774 = vrot.lane.b32.xlu1 %v3917_v43, %s2954_s13  ;;  %871 = vst.msk [vmem:[#allocation3 + $0xa0] sm:$0xff] %vm850_vm4, %v795_v50 }
 0x1da   : > { %2880 = vmatprep.mubr.msk.bf16.mxu0 %vm2117_vm11, %v2082_v47  ;;  %617 = vrot.lane.b32.xlu0 %v1102_v58, %s2948_s30  ;;  %v1880_v47 = vld [vmem:[#allocation2 + $0x1a2] sm:$0xff] }
 0x1db   : > { %v608_v51 = vpop.permute.xlu1 %607 }
 0x1dc   : > { %681 = vst.msk [vmem:[#allocation3 + $0xb8] sm:$0xff] %vm657_vm3, %v608_v51  ;;  %v799_v53 = vpop.permute.xlu0 %798 }
 0x1dd   : > { %1963 = vrot.lane.b32.xlu1 %v3890_v7, %s2955_s16  ;;  %873 = vst.msk [vmem:[#allocation3 + $0xb0] sm:$0xff] %vm850_vm4, %v799_v53 }
 0x1de   : > { %1965 = vrot.lane.b32.xlu0 %v3931_v52, %s2955_s16 }
 0x1df   : > { %v797_v34 = vpop.permute.xlu1 %796  ;;  %v2061_v54 = vld [vmem:[#allocation3 + $0x98] sm:$0xff] }
 0x1e0   : > { %872 = vst.msk [vmem:[#allocation3 + $0xa8] sm:$0xff] %vm850_vm4, %v797_v34  ;;  %v2083_v55 = vpack.c.bf16 %v2061_v54, %v2060_v33  ;;  %v988_v56 = vpop.permute.xlu0 %987 }
 0x1e1   : > { %619 = vrot.lane.b32.xlu1 %v3875_v26, %s2948_s30  ;;  %1064 = vst.msk [vmem:[#allocation3 + $0xa0] sm:$0xff] %vm1043_vm5, %v988_v56 }
 0x1e2   : > { %2881 = vmatmul.mubr.msk.bf16.gmra.mrb[16].mxu0 %vm2117_vm11, %v2083_v55  ;;  %621 = vrot.lane.b32.xlu0 %v3909_v48, %s2948_s30 }
 0x1e3   : > { %v801_v63 = vpop.permute.xlu1 %800 }
 0x1e4   : > { %874 = vst.msk [vmem:[#allocation3 + $0xb8] sm:$0xff] %vm850_vm4, %v801_v63  ;;  %v992_v37 = vpop.permute.xlu0 %991 }
 0x1e5   : > { %1967 = vrot.lane.b32.xlu1 %v1876_v36, %s2955_s16  ;;  %1066 = vst.msk [vmem:[#allocation3 + $0xb0] sm:$0xff] %vm1043_vm5, %v992_v37 }
 0x1e6   : > { %810 = vrot.lane.b32.xlu0 %v3883_v29, %s2949_s8 }
 0x1e7   : > { %v990_v62 = vpop.permute.xlu1 %989 }
 0x1e8   : > { %1065 = vst.msk [vmem:[#allocation3 + $0xa8] sm:$0xff] %vm1043_vm5, %v990_v62  ;;  %v1181_v41 = vpop.permute.xlu0 %1180 }
 0x1e9   : > { %623 = vrot.lane.b32.xlu1 %v3917_v43, %s2948_s30  ;;  %1257 = vst.msk [vmem:[#allocation3 + $0xa0] sm:$0xff] %vm1236_vm6, %v1181_v41 }
 0x1ea   : > { %814 = vrot.lane.b32.xlu0 %v3931_v52, %s2949_s8 }
 0x1eb   : > { %v994_v1 = vpop.permute.xlu1 %993 }
 0x1ec   : > { %1067 = vst.msk [vmem:[#allocation3 + $0xb8] sm:$0xff] %vm1043_vm5, %v994_v1  ;;  %v1185_v2 = vpop.permute.xlu0 %1184 }
 0x1ed   : > { %812 = vrot.lane.b32.xlu1 %v3890_v7, %s2949_s8  ;;  %1259 = vst.msk [vmem:[#allocation3 + $0xb0] sm:$0xff] %vm1236_vm6, %v1185_v2 }
 0x1ee   : > { %1003 = vrot.lane.b32.xlu0 %v3679_v61, %s2950_s9 }
 0x1ef   : > { %v1183_v3 = vpop.permute.xlu1 %1182 }
 0x1f0   : > { %1258 = vst.msk [vmem:[#allocation3 + $0xa8] sm:$0xff] %vm1236_vm6, %v1183_v3  ;;  %v1374_v5 = vpop.permute.xlu0 %1373 }
 0x1f1   : > { %816 = vrot.lane.b32.xlu1 %v1876_v36, %s2949_s8  ;;  %1450 = vst.msk [vmem:[#allocation3 + $0xa0] sm:$0xff] %vm1429_vm7, %v1374_v5 }
 0x1f2   : > { %1007 = vrot.lane.b32.xlu0 %v913_v4, %s2950_s9 }
 0x1f3   : > { %v1187_v6 = vpop.permute.xlu1 %1186 }
 0x1f4   : > { %1260 = vst.msk [vmem:[#allocation3 + $0xb8] sm:$0xff] %vm1236_vm6, %v1187_v6  ;;  %v1378_v61 = vpop.permute.xlu0 %1377 }
 0x1f5   : > { %1005 = vrot.lane.b32.xlu1 %v3681_v57, %s2950_s9  ;;  %v3967_v9 = vpop.f32.mrb[4].mxu0  ;;  %1452 = vst.msk [vmem:[#allocation3 + $0xb0] sm:$0xff] %vm1429_vm7, %v1378_v61  ;;  %v1106_v57 = vld [vmem:[#allocation2 + $0x181] sm:$0xff] }
 0x1f6   : > { %v3969_v10 = vpop.f32.mrb[5].mxu0  ;;  %1196 = vrot.lane.b32.xlu0 %v3909_v48, %s2951_s10 }
 0x1f7   : > { %v1376_v12 = vpop.permute.xlu1 %1375  ;;  %v3971_v13 = vpop.f32.mrb[6].mxu0 }
 0x1f8   : > { %1451 = vst.msk [vmem:[#allocation3 + $0xa8] sm:$0xff] %vm1429_vm7, %v1376_v12  ;;  %v3975_v14 = vpop.f32.mrb[7].mxu0  ;;  %v1568_v15 = vpop.permute.xlu0 %1567 }
 0x1f9   : > { %1009 = vrot.lane.b32.xlu1 %v914_v11, %s2950_s9  ;;  %1644 = vst.msk [vmem:[#allocation3 + $0xa0] sm:$0xff] %vm1623_vm8, %v1568_v15 }
 0x1fa   : > { %1200 = vrot.lane.b32.xlu0 %v1106_v57, %s2951_s10 }
 0x1fb   : > { %v1380_v16 = vpop.permute.xlu1 %1379 }
 0x1fc   : > { %1453 = vst.msk [vmem:[#allocation3 + $0xb8] sm:$0xff] %vm1429_vm7, %v1380_v16  ;;  %v1572_v18 = vpop.permute.xlu0 %1571 }
 0x1fd   : > { %1198 = vrot.lane.b32.xlu1 %v3917_v43, %s2951_s10  ;;  %1646 = vst.msk [vmem:[#allocation3 + $0xb0] sm:$0xff] %vm1623_vm8, %v1572_v18  ;;  %v1879_v43 = vld [vmem:[#allocation2 + $0x19a] sm:$0xff] }
 0x1fe   : > { %1389 = vrot.lane.b32.xlu0 %v3931_v52, %s2952_s11 }
 0x1ff   : > { %v1570_v21 = vpop.permute.xlu1 %1569 }
 0x200   : > { %1645 = vst.msk [vmem:[#allocation3 + $0xa8] sm:$0xff] %vm1623_vm8, %v1570_v21  ;;  %v1761_v58 = vpop.permute.xlu0 %1760 }
 0x201   : > { %1202 = vrot.lane.b32.xlu1 %v1107_v17, %s2951_s10  ;;  %1837 = vst.msk [vmem:[#allocation3 + $0xa0] sm:$0xff] %vm1816_vm9, %v1761_v58  ;;  %s2755_s10 = sshll.u32 %s4567_s25, 8 }
 0x202   : > { %1393 = vrot.lane.b32.xlu0 %v1299_v40, %s2952_s11 }
 0x203   : > { %v1574_v24 = vpop.permute.xlu1 %1573 }
 0x204   : > { %1647 = vst.msk [vmem:[#allocation3 + $0xb8] sm:$0xff] %vm1623_vm8, %v1574_v24  ;;  %v1765_v26 = vpop.permute.xlu0 %1764 }
 0x205   : > { %1391 = vrot.lane.b32.xlu1 %v1876_v36, %s2952_s11  ;;  %1839 = vst.msk [vmem:[#allocation3 + $0xb0] sm:$0xff] %vm1816_vm9, %v1765_v26 }
 0x206   : > { %1583 = vrot.lane.b32.xlu0 %v913_v4, %s2953_s12 }
 0x207   : > { %v1763_v27 = vpop.permute.xlu1 %1762 }
 0x208   : > { %1838 = vst.msk [vmem:[#allocation3 + $0xa8] sm:$0xff] %vm1816_vm9, %v1763_v27  ;;  %v1954_v29 = vpop.permute.xlu0 %1953 }
 0x209   : > { %1395 = vrot.lane.b32.xlu1 %v1300_v25, %s2952_s11  ;;  %2030 = vst.msk [vmem:[#allocation3 + $0xa0] sm:$0xff] %vm2009_vm10, %v1954_v29 }
 0x20a   : > { %1587 = vrot.lane.b32.xlu0 %v1493_v28, %s2953_s12 }
 0x20b   : > { %v1767_v30 = vpop.permute.xlu1 %1766 }
 0x20c   : > { %1840 = vst.msk [vmem:[#allocation3 + $0xb8] sm:$0xff] %vm1816_vm9, %v1767_v30  ;;  %v610_v7 = vpop.permute.xlu0 %609 }
 0x20d   : > { %1585 = vrot.lane.b32.xlu1 %v914_v11, %s2953_s12  ;;  %682 = vst.msk [vmem:[#allocation3 + $0xc0] sm:$0xff] %vm657_vm3, %v610_v7 }
 0x20e   : > { %1776 = vrot.lane.b32.xlu0 %v1106_v57, %s2954_s13 }
 0x20f   : > { %v1956_v31 = vpop.permute.xlu1 %1955 }
 0x210   : > { %2031 = vst.msk [vmem:[#allocation3 + $0xa8] sm:$0xff] %vm2009_vm10, %v1956_v31  ;;  %v1958_v60 = vpop.permute.xlu0 %1957  ;;  %v2062_v49 = vld [vmem:[#allocation3 + $0xa0] sm:$0xff] }
 0x211   : > { %1589 = vrot.lane.b32.xlu1 %v1494_v59, %s2953_s12  ;;  %2032 = vst.msk [vmem:[#allocation3 + $0xb0] sm:$0xff] %vm2009_vm10, %v1958_v60 }
 0x212   : > { %1780 = vrot.lane.b32.xlu0 %v1686_v38, %s2954_s13 }
 0x213   : > { %v612_v8 = vpop.permute.xlu1 %611 }
 0x214   : > { %683 = vst.msk [vmem:[#allocation3 + $0xc8] sm:$0xff] %vm657_vm3, %v612_v8  ;;  %v614_v48 = vpop.permute.xlu0 %613 }
 0x215   : > { %1778 = vrot.lane.b32.xlu1 %v1107_v17, %s2954_s13  ;;  %684 = vst.msk [vmem:[#allocation3 + $0xd0] sm:$0xff] %vm657_vm3, %v614_v48 }
 0x216   : > { %1969 = vrot.lane.b32.xlu0 %v1299_v40, %s2955_s16 }
 0x217   : > { %v1960_v39 = vpop.permute.xlu1 %1959  ;;  %v2063_v42 = vld [vmem:[#allocation3 + $0xa8] sm:$0xff] }
 0x218   : > { %2033 = vst.msk [vmem:[#allocation3 + $0xb8] sm:$0xff] %vm2009_vm10, %v1960_v39  ;;  %v2084_v32 = vpack.c.bf16 %v2063_v42, %v2062_v49  ;;  %v803_v44 = vpop.permute.xlu0 %802  ;;  %v2064_v46 = vld [vmem:[#allocation3 + $0xb0] sm:$0xff] }
 0x219   : > { %1782 = vrot.lane.b32.xlu1 %v1687_v35, %s2954_s13  ;;  %875 = vst.msk [vmem:[#allocation3 + $0xc0] sm:$0xff] %vm850_vm4, %v803_v44  ;;  %s4395_s13 = scalar_lea.vmem %s4535_s7, %s2755_s10 }
 0x21a   : > { %2884 = vmatprep.mubr.msk.bf16.mxu1 %vm2117_vm11, %v2084_v32  ;;  %1973 = vrot.lane.b32.xlu0 %v1879_v43, %s2955_s16 }
 0x21b   : > { %v616_v45 = vpop.permute.xlu1 %615 }
 0x21c   : > { %685 = vst.msk [vmem:[#allocation3 + $0xd8] sm:$0xff] %vm657_vm3, %v616_v45  ;;  %v807_v50 = vpop.permute.xlu0 %806 }
 0x21d   : > { %1971 = vrot.lane.b32.xlu1 %v1300_v25, %s2955_s16  ;;  %877 = vst.msk [vmem:[#allocation3 + $0xd0] sm:$0xff] %vm850_vm4, %v807_v50 }
 0x21f   : > { %v805_v51 = vpop.permute.xlu1 %804  ;;  %v2065_v33 = vld [vmem:[#allocation3 + $0xb8] sm:$0xff] }
 0x220   : > { %876 = vst.msk [vmem:[#allocation3 + $0xc8] sm:$0xff] %vm850_vm4, %v805_v51  ;;  %v2085_v52 = vpack.c.bf16 %v2065_v33, %v2064_v46  ;;  %v996_v53 = vpop.permute.xlu0 %995 }
 0x221   : > { %1975 = vrot.lane.b32.xlu1 %v1880_v47, %s2955_s16  ;;  %1068 = vst.msk [vmem:[#allocation3 + $0xc0] sm:$0xff] %vm1043_vm5, %v996_v53 }
 0x222   : > { %2885 = vmatmul.mubr.msk.bf16.vlgmr.msra.gmra.mrb[0].mxu1 %vm2117_vm11, %v2085_v52 }
 0x223   : > { %v809_v34 = vpop.permute.xlu1 %808 }
 0x224   : > { %878 = vst.msk [vmem:[#allocation3 + $0xd8] sm:$0xff] %vm850_vm4, %v809_v34  ;;  %v1000_v54 = vpop.permute.xlu0 %999 }
 0x225   : > { %1070 = vst.msk [vmem:[#allocation3 + $0xd0] sm:$0xff] %vm1043_vm5, %v1000_v54 }
 0x227   : > { %v998_v55 = vpop.permute.xlu1 %997 }
 0x228   : > { %1069 = vst.msk [vmem:[#allocation3 + $0xc8] sm:$0xff] %vm1043_vm5, %v998_v55  ;;  %v1189_v36 = vpop.permute.xlu0 %1188 }
 0x229   : > { %1261 = vst.msk [vmem:[#allocation3 + $0xc0] sm:$0xff] %vm1236_vm6, %v1189_v36 }
 0x22b   : > { %v1002_v56 = vpop.permute.xlu1 %1001 }
 0x22c   : > { %1071 = vst.msk [vmem:[#allocation3 + $0xd8] sm:$0xff] %vm1043_vm5, %v1002_v56  ;;  %v1193_v63 = vpop.permute.xlu0 %1192 }
 0x22d   : > { %1263 = vst.msk [vmem:[#allocation3 + $0xd0] sm:$0xff] %vm1236_vm6, %v1193_v63 }
 0x22f   : > { %v1191_v37 = vpop.permute.xlu1 %1190 }
 0x230   : > { %1262 = vst.msk [vmem:[#allocation3 + $0xc8] sm:$0xff] %vm1236_vm6, %v1191_v37  ;;  %v1382_v62 = vpop.permute.xlu0 %1381 }
 0x231   : > { %1454 = vst.msk [vmem:[#allocation3 + $0xc0] sm:$0xff] %vm1429_vm7, %v1382_v62 }
 0x233   : > { %v1195_v41 = vpop.permute.xlu1 %1194 }
 0x234   : > { %1264 = vst.msk [vmem:[#allocation3 + $0xd8] sm:$0xff] %vm1236_vm6, %v1195_v41  ;;  %v1386_v3 = vpop.permute.xlu0 %1385 }
 0x235   : > { %v4033_v1 = vpop.f32.mrb[8].mxu0  ;;  %1456 = vst.msk [vmem:[#allocation3 + $0xd0] sm:$0xff] %vm1429_vm7, %v1386_v3 }
 0x236   : > { %v4035_v2 = vpop.f32.mrb[9].mxu0 }
 0x237   : > { %v1384_v4 = vpop.permute.xlu1 %1383  ;;  %v4037_v5 = vpop.f32.mrb[10].mxu0 }
 0x238   : > { %1455 = vst.msk [vmem:[#allocation3 + $0xc8] sm:$0xff] %vm1429_vm7, %v1384_v4  ;;  %v4041_v6 = vpop.f32.mrb[11].mxu0  ;;  %v1576_v11 = vpop.permute.xlu0 %1575 }
 0x239   : > { %1648 = vst.msk [vmem:[#allocation3 + $0xc0] sm:$0xff] %vm1623_vm8, %v1576_v11 }
 0x23b   : > { %v1388_v61 = vpop.permute.xlu1 %1387 }
 0x23c   : > { %1457 = vst.msk [vmem:[#allocation3 + $0xd8] sm:$0xff] %vm1429_vm7, %v1388_v61  ;;  %v1580_v12 = vpop.permute.xlu0 %1579 }
 0x23d   : > { %1650 = vst.msk [vmem:[#allocation3 + $0xd0] sm:$0xff] %vm1623_vm8, %v1580_v12 }
 0x23f   : > { %v1578_v57 = vpop.permute.xlu1 %1577 }
 0x240   : > { %1649 = vst.msk [vmem:[#allocation3 + $0xc8] sm:$0xff] %vm1623_vm8, %v1578_v57  ;;  %v1769_v15 = vpop.permute.xlu0 %1768 }
 0x241   : > { %1841 = vst.msk [vmem:[#allocation3 + $0xc0] sm:$0xff] %vm1816_vm9, %v1769_v15 }
 0x243   : > { %v1582_v16 = vpop.permute.xlu1 %1581 }
 0x244   : > { %1651 = vst.msk [vmem:[#allocation3 + $0xd8] sm:$0xff] %vm1623_vm8, %v1582_v16  ;;  %v1773_v17 = vpop.permute.xlu0 %1772 }
 0x245   : > { %1843 = vst.msk [vmem:[#allocation3 + $0xd0] sm:$0xff] %vm1816_vm9, %v1773_v17 }
 0x247   : > { %v1771_v18 = vpop.permute.xlu1 %1770 }
 0x248   : > { %1842 = vst.msk [vmem:[#allocation3 + $0xc8] sm:$0xff] %vm1816_vm9, %v1771_v18  ;;  %v1962_v21 = vpop.permute.xlu0 %1961 }
 0x249   : > { %2034 = vst.msk [vmem:[#allocation3 + $0xc0] sm:$0xff] %vm2009_vm10, %v1962_v21 }
 0x24b   : > { %v1775_v40 = vpop.permute.xlu1 %1774 }
 0x24c   : > { %1844 = vst.msk [vmem:[#allocation3 + $0xd8] sm:$0xff] %vm1816_vm9, %v1775_v40  ;;  %v618_v58 = vpop.permute.xlu0 %617 }
 0x24d   : > { %686 = vst.msk [vmem:[#allocation3 + $0xe0] sm:$0xff] %vm657_vm3, %v618_v58 }
 0x24f   : > { %v1964_v24 = vpop.permute.xlu1 %1963 }
 0x250   : > { %2035 = vst.msk [vmem:[#allocation3 + $0xc8] sm:$0xff] %vm2009_vm10, %v1964_v24  ;;  %v1966_v25 = vpop.permute.xlu0 %1965  ;;  %v2066_v27 = vld [vmem:[#allocation3 + $0xc0] sm:$0xff] }
 0x251   : > { %2036 = vst.msk [vmem:[#allocation3 + $0xd0] sm:$0xff] %vm2009_vm10, %v1966_v25 }
 0x253   : > { %v620_v26 = vpop.permute.xlu1 %619 }
 0x254   : > { %687 = vst.msk [vmem:[#allocation3 + $0xe8] sm:$0xff] %vm657_vm3, %v620_v26  ;;  %v622_v28 = vpop.permute.xlu0 %621 }
 0x255   : > { %688 = vst.msk [vmem:[#allocation3 + $0xf0] sm:$0xff] %vm657_vm3, %v622_v28 }
 0x257   : > { %v1968_v29 = vpop.permute.xlu1 %1967  ;;  %v2067_v30 = vld [vmem:[#allocation3 + $0xc8] sm:$0xff] }
 0x258   : > { %2037 = vst.msk [vmem:[#allocation3 + $0xd8] sm:$0xff] %vm2009_vm10, %v1968_v29  ;;  %v2086_v59 = vpack.c.bf16 %v2067_v30, %v2066_v27  ;;  %v811_v7 = vpop.permute.xlu0 %810  ;;  %v2068_v38 = vld [vmem:[#allocation3 + $0xd0] sm:$0xff] }
 0x259   : > { %879 = vst.msk [vmem:[#allocation3 + $0xe0] sm:$0xff] %vm850_vm4, %v811_v7  ;;  %v4124_v7 = vld [vmem:[%s4530_s2] ss:$0 sm:$0xff] }
 0x25a   : > { %2888 = vmatprep.mubr.msk.bf16.mxu1 %vm2117_vm11, %v2086_v59  ;;  %v2435_v59 = vld [vmem:[%s4531_s3] sm:$0xff] }
 0x25b   : > { %v624_v31 = vpop.permute.xlu1 %623  ;;  %2897 = vmatpush3.msra.mxu1 %v2435_v59 }
 0x25c   : > { %689 = vst.msk [vmem:[#allocation3 + $0xf8] sm:$0xff] %vm657_vm3, %v624_v31  ;;  %v815_v60 = vpop.permute.xlu0 %814  ;;  %2901 = vmatprep.subr.mxu1 %v2947_v0  ;;  %v4129_v31 = vadd.f32 %v4124_v7, %v3864_v23 }
 0x25d   : > { %881 = vst.msk [vmem:[#allocation3 + $0xf0] sm:$0xff] %vm850_vm4, %v815_v60 }
 0x25e   : > { %v2332_v60 = vmax.f32 %v4129_v31, 0.0 }
 0x25f   : > { %v813_v8 = vpop.permute.xlu1 %812  ;;  %v2069_v49 = vld [vmem:[#allocation3 + $0xd8] sm:$0xff] }
 0x260   : > { %880 = vst.msk [vmem:[#allocation3 + $0xe8] sm:$0xff] %vm850_vm4, %v813_v8  ;;  %v2087_v35 = vpack.c.bf16 %v2069_v49, %v2068_v38  ;;  %v1004_v48 = vpop.permute.xlu0 %1003  ;;  %v4133_v38 = vadd.f32 %v4124_v7, %v3858_v20  ;;  %v4138_v8 = vadd.f32 %v3856_v19, %v4124_v7  ;;  %v4154_v19 = vadd.f32 %v4124_v7, %v3969_v10 }
 0x261   : > { %1072 = vst.msk [vmem:[#allocation3 + $0xe0] sm:$0xff] %vm1043_vm5, %v1004_v48  ;;  %v4150_v48 = vadd.f32 %v3860_v22, %v4124_v7 }
 0x262   : > { %2889 = vmatmul.mubr.msk.bf16.gmra.mrb[4].mxu1 %vm2117_vm11, %v2087_v35  ;;  %v2331_v49 = vmax.f32 %v4133_v38, 0.0  ;;  %v2365_v35 = vsel %vm2363_vm13, %v2332_v60, 0.0  ;;  %v2333_v23 = vmax.f32 %v4138_v8, 0.0 }
 0x263   : > { %v817_v39 = vpop.permute.xlu1 %816 }
 0x264   : > { %882 = vst.msk [vmem:[#allocation3 + $0xf8] sm:$0xff] %vm850_vm4, %v817_v39  ;;  %v1008_v42 = vpop.permute.xlu0 %1007  ;;  %v2364_v20 = vsel %vm2363_vm13, %v2331_v49, 0.0 }
 0x265   : > { %1074 = vst.msk [vmem:[#allocation3 + $0xf0] sm:$0xff] %vm1043_vm5, %v1008_v42  ;;  %v2366_v39 = vadd.f32 %v2365_v35, %v2364_v20  ;;  %v2367_v42 = vsel %vm2363_vm13, %v2333_v23, 0.0 }
 0x267   : > { %v1006_v32 = vpop.permute.xlu1 %1005 }
 0x268   : > { %1073 = vst.msk [vmem:[#allocation3 + $0xe8] sm:$0xff] %vm1043_vm5, %v1006_v32  ;;  %v1197_v43 = vpop.permute.xlu0 %1196  ;;  %v2334_v32 = vmax.f32 %v4150_v48, 0.0 }
 0x269   : > { %1265 = vst.msk [vmem:[#allocation3 + $0xe0] sm:$0xff] %vm1236_vm6, %v1197_v43  ;;  %v2335_v43 = vmax.f32 %v4154_v19, 0.0 }
 0x26a   : > { %v2369_v22 = vsel %vm2363_vm13, %v2334_v32, 0.0 }
 0x26b   : > { %v1010_v44 = vpop.permute.xlu1 %1009  ;;  %v2371_v10 = vsel %vm2363_vm13, %v2335_v43, 0.0 }
 0x26c   : > { %1075 = vst.msk [vmem:[#allocation3 + $0xf8] sm:$0xff] %vm1043_vm5, %v1010_v44  ;;  %v1201_v45 = vpop.permute.xlu0 %1200  ;;  %v4163_v44 = vadd.f32 %v4124_v7, %v3975_v14 }
 0x26d   : > { %1267 = vst.msk [vmem:[#allocation3 + $0xf0] sm:$0xff] %vm1236_vm6, %v1201_v45  ;;  %v2368_v45 = vadd.f32 %v2367_v42, %v2366_v39 }
 0x26f   : > { %v1199_v46 = vpop.permute.xlu1 %1198 }
 0x270   : > { %1266 = vst.msk [vmem:[#allocation3 + $0xe8] sm:$0xff] %vm1236_vm6, %v1199_v46  ;;  %v1390_v47 = vpop.permute.xlu0 %1389  ;;  %v2336_v46 = vmax.f32 %v4163_v44, 0.0 }
 0x271   : > { %1458 = vst.msk [vmem:[#allocation3 + $0xe0] sm:$0xff] %vm1429_vm7, %v1390_v47  ;;  %v2370_v47 = vadd.f32 %v2369_v22, %v2368_v45 }
 0x272   : > { %v2373_v14 = vsel %vm2363_vm13, %v2336_v46, 0.0 }
 0x273   : > { %v1203_v50 = vpop.permute.xlu1 %1202 }
 0x274   : > { %1268 = vst.msk [vmem:[#allocation3 + $0xf8] sm:$0xff] %vm1236_vm6, %v1203_v50  ;;  %v1394_v52 = vpop.permute.xlu0 %1393  ;;  %v4174_v50 = vadd.f32 %v3967_v9, %v4124_v7 }
 0x275   : > { %v4075_v51 = vpop.f32.mrb[12].mxu0  ;;  %1460 = vst.msk [vmem:[#allocation3 + $0xf0] sm:$0xff] %vm1429_vm7, %v1394_v52  ;;  %v2372_v52 = vadd.f32 %v2371_v10, %v2370_v47 }
 0x276   : > { %v4077_v33 = vpop.f32.mrb[13].mxu0  ;;  %v4240_v22 = vadd.f32 %v4075_v51, %v4124_v7 }
 0x277   : > { %v1392_v53 = vpop.permute.xlu1 %1391  ;;  %v4079_v34 = vpop.f32.mrb[14].mxu0 }
 0x278   : > { %1459 = vst.msk [vmem:[#allocation3 + $0xe8] sm:$0xff] %vm1429_vm7, %v1392_v53  ;;  %v4083_v54 = vpop.f32.mrb[15].mxu0  ;;  %v1584_v55 = vpop.permute.xlu0 %1583  ;;  %v2337_v53 = vmax.f32 %v4174_v50, 0.0  ;;  %v4550_v47 = vmax.f32 %v4240_v22, 0.0 }
 0x279   : > { %1652 = vst.msk [vmem:[#allocation3 + $0xe0] sm:$0xff] %vm1623_vm8, %v1584_v55  ;;  %v4182_v55 = vadd.f32 %v3971_v13, %v4124_v7 }
 0x27a   : > { %v2375_v9 = vsel %vm2363_vm13, %v2337_v53, 0.0  ;;  %v2391_v51 = vsel %vm2363_vm13, %v4550_v47, 0.0 }
 0x27b   : > { %v1396_v36 = vpop.permute.xlu1 %1395 }
 0x27c   : > { %1461 = vst.msk [vmem:[#allocation3 + $0xf8] sm:$0xff] %vm1429_vm7, %v1396_v36  ;;  %v1588_v56 = vpop.permute.xlu0 %1587  ;;  %v4186_v36 = vadd.f32 %v4124_v7, %v4035_v2 }
 0x27d   : > { %1654 = vst.msk [vmem:[#allocation3 + $0xf0] sm:$0xff] %vm1623_vm8, %v1588_v56  ;;  %v2374_v56 = vadd.f32 %v2373_v14, %v2372_v52  ;;  %v4248_v52 = vadd.f32 %v4079_v34, %v4124_v7 }
 0x27f   : > { %v1586_v63 = vpop.permute.xlu1 %1585 }
 0x280   : > { %1653 = vst.msk [vmem:[#allocation3 + $0xe8] sm:$0xff] %vm1623_vm8, %v1586_v63  ;;  %v1777_v37 = vpop.permute.xlu0 %1776  ;;  %v2338_v63 = vmax.f32 %v4182_v55, 0.0 }
 0x281   : > { %1845 = vst.msk [vmem:[#allocation3 + $0xe0] sm:$0xff] %vm1816_vm9, %v1777_v37  ;;  %v2339_v37 = vmax.f32 %v4186_v36, 0.0 }
 0x282   : > { %v2377_v13 = vsel %vm2363_vm13, %v2338_v63, 0.0 }
 0x283   : > { %v1590_v62 = vpop.permute.xlu1 %1589  ;;  %v2379_v2 = vsel %vm2363_vm13, %v2339_v37, 0.0 }
 0x284   : > { %1655 = vst.msk [vmem:[#allocation3 + $0xf8] sm:$0xff] %vm1623_vm8, %v1590_v62  ;;  %v1781_v41 = vpop.permute.xlu0 %1780  ;;  %v4195_v62 = vadd.f32 %v4124_v7, %v4041_v6 }
 0x285   : > { %1847 = vst.msk [vmem:[#allocation3 + $0xf0] sm:$0xff] %vm1816_vm9, %v1781_v41  ;;  %v2376_v41 = vadd.f32 %v2375_v9, %v2374_v56  ;;  %v4549_v9 = vmax.f32 %v4248_v52, 0.0 }
 0x287   : > { %v1779_v3 = vpop.permute.xlu1 %1778  ;;  %v2393_v34 = vsel %vm2363_vm13, %v4549_v9, 0.0 }
 0x288   : > { %1846 = vst.msk [vmem:[#allocation3 + $0xe8] sm:$0xff] %vm1816_vm9, %v1779_v3  ;;  %v1970_v4 = vpop.permute.xlu0 %1969  ;;  %v2340_v3 = vmax.f32 %v4195_v62, 0.0 }
 0x289   : > { %2038 = vst.msk [vmem:[#allocation3 + $0xe0] sm:$0xff] %vm2009_vm10, %v1970_v4  ;;  %v2378_v4 = vadd.f32 %v2377_v13, %v2376_v41 }
 0x28a   : > { %v2381_v6 = vsel %vm2363_vm13, %v2340_v3, 0.0 }
 0x28b   : > { %v1783_v11 = vpop.permute.xlu1 %1782 }
 0x28c   : > { %1848 = vst.msk [vmem:[#allocation3 + $0xf8] sm:$0xff] %vm1816_vm9, %v1783_v11  ;;  %v1974_v61 = vpop.permute.xlu0 %1973  ;;  %v4206_v11 = vadd.f32 %v4033_v1, %v4124_v7 }
 0x28d   : > { %2040 = vst.msk [vmem:[#allocation3 + $0xf0] sm:$0xff] %vm2009_vm10, %v1974_v61  ;;  %v2380_v61 = vadd.f32 %v2379_v2, %v2378_v4 }
 0x28f   : > { %v1972_v12 = vpop.permute.xlu1 %1971 }
 0x290   : > { %2039 = vst.msk [vmem:[#allocation3 + $0xe8] sm:$0xff] %vm2009_vm10, %v1972_v12  ;;  %v2070_v15 = vld [vmem:[#allocation3 + $0xe0] sm:$0xff]  ;;  %v2341_v12 = vmax.f32 %v4206_v11, 0.0 }
 0x293   : > { %v1976_v57 = vpop.permute.xlu1 %1975 }
 0x294   : > { %2041 = vst.msk [vmem:[#allocation3 + $0xf8] sm:$0xff] %vm2009_vm10, %v1976_v57  ;;  %v2072_v18 = vld [vmem:[#allocation3 + $0xf0] sm:$0xff]  ;;  %v4214_v57 = vadd.f32 %v4037_v5, %v4124_v7  ;;  %v4229_v5 = vadd.f32 %v4124_v7, %v4083_v54 }
 0x296   : > { %v2342_v59 = vmax.f32 %v4214_v57, 0.0  ;;  %v2344_v42 = vmax.f32 %v4229_v5, 0.0 }
 0x297   : > { %v2071_v16 = vld [vmem:[#allocation3 + $0xe8] sm:$0xff] }
 0x298   : > { %v2088_v17 = vpack.c.bf16 %v2071_v16, %v2070_v15  ;;  %v4218_v15 = vadd.f32 %v4124_v7, %v4077_v33  ;;  %v2385_v20 = vsel %vm2363_vm13, %v2342_v59, 0.0  ;;  %v2389_v54 = vsel %vm2363_vm13, %v2344_v42, 0.0 }
 0x29a   : > { %2892 = vmatprep.mubr.msk.bf16.mxu1 %vm2117_vm11, %v2088_v17  ;;  %v2382_v17 = vadd.f32 %v2381_v6, %v2380_v61  ;;  %v2343_v35 = vmax.f32 %v4218_v15, 0.0 }
 0x29b   : > { %v2073_v21 = vld [vmem:[#allocation3 + $0xf8] sm:$0xff] }
 0x29c   : > { %v2089_v40 = vpack.c.bf16 %v2073_v21, %v2072_v18  ;;  %v2387_v39 = vsel %vm2363_vm13, %v2343_v35, 0.0 }
 0x29e   : > { %2893 = vmatmul.mubr.msk.bf16.gmra.mrb[8].mxu1 %vm2117_vm11, %v2089_v40  ;;  %v2383_v40 = vsel %vm2363_vm13, %v2341_v12, 0.0 }
 0x29f   : > { %2898 = vmatprep.mubr.msk.f32.mxu1 %vm2956_vm12, %v2947_v0  ;;  %v2384_v33 = vadd.f32 %v2383_v40, %v2382_v17 }
 0x2a1   : > { %v2386_v45 = vadd.f32 %v2385_v20, %v2384_v33 }
 0x2a3   : > { %v2388_v10 = vadd.f32 %v2387_v39, %v2386_v45 }
 0x2a5   : > { %v2390_v56 = vadd.f32 %v2389_v54, %v2388_v10 }
 0x2a7   : > { %v2392_v2 = vadd.f32 %v2391_v51, %v2390_v56 }
 0x2a9   : > { %v2394_v61 = vadd.f32 %v2393_v34, %v2392_v2 }
 0x2b5   : > { %v4100_v58 = vpop.f32.mrb[16].mxu0 }
 0x2b6   : > { %v4102_v24 = vpop.f32.mrb[17].mxu0  ;;  %v4272_v6 = vadd.f32 %v4100_v58, %v4124_v7 }
 0x2b7   : > { %v4104_v25 = vpop.f32.mrb[18].mxu0  ;;  %v4252_v14 = vadd.f32 %v4124_v7, %v4102_v24 }
 0x2b8   : > { %v4106_v26 = vpop.f32.mrb[19].mxu0  ;;  %v4545_v40 = vmax.f32 %v4272_v6, 0.0  ;;  %v4280_v33 = vadd.f32 %v4104_v25, %v4124_v7 }
 0x2b9   : > { %v4548_v41 = vmax.f32 %v4252_v14, 0.0  ;;  %v4261_v13 = vadd.f32 %v4124_v7, %v4106_v26 }
 0x2ba   : > { %v2399_v58 = vsel %vm2363_vm13, %v4545_v40, 0.0  ;;  %v4543_v45 = vmax.f32 %v4280_v33, 0.0 }
 0x2bb   : > { %v2395_v24 = vsel %vm2363_vm13, %v4548_v41, 0.0  ;;  %v4547_v4 = vmax.f32 %v4261_v13, 0.0  ;;  %v4554_v36 = vmax.f32 %v4261_v13, 0.0 }
 0x2bc   : > { %v2396_v17 = vadd.f32 %v2395_v24, %v2394_v61  ;;  %v2401_v25 = vsel %vm2363_vm13, %v4543_v45, 0.0 }
 0x2bd   : > { %v2397_v26 = vsel %vm2363_vm13, %v4547_v4, 0.0 }
 0x2be   : > { %v2398_v39 = vadd.f32 %v2397_v26, %v2396_v17 }
 0x2c0   : > { %v2400_v56 = vadd.f32 %v2399_v58, %v2398_v39 }
 0x2c2   : > { %v2402_v2 = vadd.f32 %v2401_v25, %v2400_v56 }
 0x2f5   : > { %v4108_v27 = vpop.f32.mrb[0].mxu1 }
 0x2f6   : > { %v4110_v28 = vpop.f32.mrb[1].mxu1  ;;  %v4304_v34 = vadd.f32 %v4108_v27, %v4124_v7 }
 0x2f7   : > { %v4112_v29 = vpop.f32.mrb[2].mxu1  ;;  %v4284_v20 = vadd.f32 %v4124_v7, %v4110_v28 }
 0x2f8   : > { %v4114_v30 = vpop.f32.mrb[3].mxu1  ;;  %v4536_v61 = vmax.f32 %v4304_v34, 0.0  ;;  %v4312_v17 = vadd.f32 %v4112_v29, %v4124_v7 }
 0x2f9   : > { %v4541_v10 = vmax.f32 %v4284_v20, 0.0  ;;  %v4293_v54 = vadd.f32 %v4124_v7, %v4114_v30 }
 0x2fa   : > { %v2407_v27 = vsel %vm2363_vm13, %v4536_v61, 0.0  ;;  %v4537_v58 = vmax.f32 %v4312_v17, 0.0 }
 0x2fb   : > { %v2403_v28 = vsel %vm2363_vm13, %v4541_v10, 0.0  ;;  %v4540_v51 = vmax.f32 %v4293_v54, 0.0  ;;  %v4558_v15 = vmax.f32 %v4293_v54, 0.0 }
 0x2fc   : > { %v2404_v24 = vadd.f32 %v2403_v28, %v2402_v2  ;;  %v2409_v29 = vsel %vm2363_vm13, %v4537_v58, 0.0 }
 0x2fd   : > { %v2405_v30 = vsel %vm2363_vm13, %v4540_v51, 0.0 }
 0x2fe   : > { %v2406_v39 = vadd.f32 %v2405_v30, %v2404_v24 }
 0x300   : > { %v2408_v28 = vadd.f32 %v2407_v27, %v2406_v39 }
 0x302   : > { %v2410_v24 = vadd.f32 %v2409_v29, %v2408_v28 }
 0x335   : > { %v2890_v16 = vpop.f32.mrb[4].mxu1 }
 0x336   : > { %v2300_v18 = vpop.f32.mrb[5].mxu1  ;;  %v4333_v30 = vadd.f32 %v2890_v16, %v4124_v7 }
 0x337   : > { %v4220_v1 = vpop.f32.mrb[6].mxu1  ;;  %v4315_v26 = vadd.f32 %v4124_v7, %v2300_v18 }
 0x338   : > { %v2303_v21 = vpop.f32.mrb[7].mxu1  ;;  %v4542_v39 = vmax.f32 %v4333_v30, 0.0  ;;  %v4341_v27 = vadd.f32 %v4220_v1, %v4124_v7 }
 0x339   : > { %v4538_v56 = vmax.f32 %v4315_v26, 0.0  ;;  %v4323_v25 = vadd.f32 %v4124_v7, %v2303_v21 }
 0x33a   : > { %v4544_v28 = vmax.f32 %v4341_v27, 0.0  ;;  %v4564_v54 = vmax.f32 %v4341_v27, 0.0 }
 0x33b   : > { %v2411_v18 = vsel %vm2363_vm13, %v4538_v56, 0.0  ;;  %v4539_v2 = vmax.f32 %v4323_v25, 0.0  ;;  %v2415_v56 = vsel %vm2363_vm13, %v4542_v39, 0.0  ;;  %v4562_v13 = vmax.f32 %v4323_v25, 0.0 }
 0x33c   : > { %v2412_v61 = vadd.f32 %v2411_v18, %v2410_v24  ;;  %v2417_v1 = vsel %vm2363_vm13, %v4544_v28, 0.0 }
 0x33d   : > { %v2413_v21 = vsel %vm2363_vm13, %v4539_v2, 0.0 }
 0x33e   : > { %v2414_v58 = vadd.f32 %v2413_v21, %v2412_v61 }
 0x340   : > { %v2416_v29 = vadd.f32 %v2415_v56, %v2414_v58 }
 0x342   : > { %v2418_v56 = vadd.f32 %v2417_v1, %v2416_v29 }
 0x371   : > { %v2894_v16 = vpop.f32.mrb[8].mxu1 }
 0x372   : > { %v2316_v18 = vpop.f32.mrb[9].mxu1  ;;  %v4348_v24 = vadd.f32 %v2894_v16, %v4124_v7 }
 0x373   : > { %v4351_v2 = vadd.f32 %v4124_v7, %v2316_v18  ;;  %v2895_v51 = vpop.f32.mrb[10].mxu1 }
 0x374   : > { %v2319_v10 = vpop.f32.mrb[11].mxu1  ;;  %v4358_v21 = vadd.f32 %v2895_v51, %v4124_v7  ;;  %v2361_v16 = vmax.f32 %v4348_v24, 0.0 }
 0x375   : > { %v4546_v61 = vmax.f32 %v4351_v2, 0.0  ;;  %v4361_v58 = vadd.f32 %v4124_v7, %v2319_v10 }
 0x376   : > { %v2362_v28 = vmax.f32 %v4358_v21, 0.0  ;;  %v2423_v7 = vsel %vm2363_vm13, %v2361_v16, 0.0 }
 0x377   : > { %v2419_v18 = vsel %vm2363_vm13, %v4546_v61, 0.0  ;;  %v2360_v39 = vmax.f32 %v4361_v58, 0.0 }
 0x378   : > { %v2420_v45 = vadd.f32 %v2419_v18, %v2418_v56  ;;  %v2425_v29 = vsel %vm2363_vm13, %v2362_v28, 0.0 }
 0x379   : > { %v2421_v51 = vsel %vm2363_vm13, %v2360_v39, 0.0 }
 0x37a   : > { %v2422_v40 = vadd.f32 %v2421_v51, %v2420_v45  ;;  %v2436_v45 = vld [vmem:[%s4532_s4] sm:$0x1] }
 0x37c   : > { %v2424_v10 = vadd.f32 %v2423_v7, %v2422_v40  ;;  %v2511_v40 = vld [vmem:[%s4533_s5] sm:$0xf] }
 0x37e   : > { %v2426_v1 = vadd.f32 %v2425_v29, %v2424_v10 }
 0x380   : > { %v2427_v61 = vrot.slane %v2426_v1, 4 }
 0x382   : > { %v2428_v4 = vadd.f32 %v2427_v61, %v2426_v1 }
 0x384   : > { %v2429_v56 = vrot.slane %v2428_v4, 2 }
 0x386   : > { %v2430_v18 = vadd.f32 %v2429_v56, %v2428_v4  ;;  %v2596_v56 = vlaneseq }
 0x388   : > { %v2431_v41 = vrot.slane %v2430_v18, 1 }
 0x38a   : > { %v2432_v9 = vadd.f32 %v2431_v41, %v2430_v18  ;;  %v2597_v18 = vshrl.u32 %v2596_v56, 7 }
 0x38c   : > { %v2434_v47 = vmul.f32 0.00390625, %v2432_v9 }
 0x38e   : > { %2899 = vmatmul.mubr.msk.f32.vlgmr.msra.gmra.mrb[12].mxu1 %vm2363_vm13, %v2434_v47 }
 0x38f   : > { %2903 = vmatprep.mubr.msk.f32.mxu1 %vm2956_vm12, %v2947_v0  ;;  %2902 = vmatpush3.msk.msra.mxu1 %vm2516_vm14, %v2511_v40  ;;  %v2512_v0 = vld [vmem:[%s4534_s6] sm:$0x1]  ;;  %v2598_v40 = vsub.s32 0, %v2597_v18 }
 0x461   : > { %v2506_v61 = vpop.f32.mrb[12].mxu1 }
 0x462   : > { %v2507_v4 = vadd.f32 %v2506_v61, %v2436_v45  ;;  %v2900_v41 = vpop.f32.mrb[13].mxu1 }
 0x464   : > { %v2510_v9 = vmax.f32 %v2507_v4, 0.0 }
 0x466   : > { %2904 = vmatmul.mubr.msk.f32.vlgmr.msra.gmra.mrb[14].mxu1 %vm280_vm0, %v2510_v9 }
 0x539   : > { %v2586_v47 = vpop.f32.mrb[14].mxu1 }
 0x53a   : > { %v2587_v51 = vadd.f32 %v2586_v47, %v2512_v0  ;;  %v2905_v7 = vpop.f32.mrb[15].mxu1 }
 0x53c   : > { %v2751_v10 = vmul.f32 -1.442695, %v2587_v51 }
 0x53e   : > { %2935 = vpow2.f32 %v2751_v10 }
 0x548   : > { %v2936_v29 = vpop.eup %2935 }
 0x549   : > { %v2593_v1 = vadd.f32 1.0, %v2936_v29 }
 0x54b   : > { %2937 = vrcp.f32 %v2593_v1 }
 0x555   : > { %v2938_v45 = vpop.eup %2937 }
 0x556   : > { %v2599_v61 = vrot.slane %v2938_v45, %v2598_v40 }
 0x558   : > { %v2600_v4 = vmul.f32 %v2599_v61, %v2331_v49  ;;  %v2601_v41 = vmul.f32 %v2599_v61, %v2332_v60  ;;  %v2602_v9 = vmul.f32 %v2599_v61, %v2333_v23  ;;  %v2603_v0 = vmul.f32 %v2599_v61, %v2334_v32 }
 0x559   : > { %v2604_v47 = vmul.f32 %v2599_v61, %v2335_v43  ;;  %v2605_v38 = vmul.f32 %v2599_v61, %v2336_v46  ;;  %v2606_v49 = vmul.f32 %v2599_v61, %v2337_v53  ;;  %v2607_v31 = vmul.f32 %v2599_v61, %v2338_v63 }
 0x55a   : > { %v2608_v60 = vmul.f32 %v2599_v61, %v2339_v37  ;;  %v2609_v8 = vmul.f32 %v2599_v61, %v2340_v3  ;;  %v2610_v23 = vmul.f32 %v2599_v61, %v2341_v12  ;;  %v2611_v48 = vmul.f32 %v2599_v61, %v2342_v59  ;;  %2632 = vst.msk [vmem:[%s4395_s13] sm:$0xff] %vm2363_vm13, %v2600_v4 }
 0x55b   : > { %2633 = vst.msk [vmem:[%s4395_s13 + $0x8] sm:$0xff] %vm2363_vm13, %v2601_v41  ;;  %2634 = vst.msk [vmem:[%s4395_s13 + $0x10] sm:$0xff] %vm2363_vm13, %v2602_v9  ;;  %v2612_v19 = vmul.f32 %v2599_v61, %v2343_v35  ;;  %v2613_v32 = vmul.f32 %v2599_v61, %v2344_v42  ;;  %v4551_v43 = vmax.f32 %v4240_v22, 0.0  ;;  %v4552_v46 = vmax.f32 %v4248_v52, 0.0 }
 0x55c   : > { %2635 = vst.msk [vmem:[%s4395_s13 + $0x18] sm:$0xff] %vm2363_vm13, %v2603_v0  ;;  %2636 = vst.msk [vmem:[%s4395_s13 + $0x20] sm:$0xff] %vm2363_vm13, %v2604_v47  ;;  %v4553_v53 = vmax.f32 %v4252_v14, 0.0  ;;  %v2617_v63 = vmul.f32 %v2599_v61, %v4554_v36  ;;  %v4555_v37 = vmax.f32 %v4272_v6, 0.0  ;;  %v4556_v3 = vmax.f32 %v4280_v33, 0.0 }
 0x55d   : > { %v2614_v44 = vmul.f32 %v2599_v61, %v4551_v43  ;;  %v2615_v50 = vmul.f32 %v2599_v61, %v4552_v46  ;;  %2637 = vst.msk [vmem:[%s4395_s13 + $0x28] sm:$0xff] %vm2363_vm13, %v2605_v38  ;;  %2638 = vst.msk [vmem:[%s4395_s13 + $0x30] sm:$0xff] %vm2363_vm13, %v2606_v49  ;;  %v4557_v12 = vmax.f32 %v4284_v20, 0.0  ;;  %v2621_v59 = vmul.f32 %v2599_v61, %v4558_v15 }
 0x55e   : > { %2639 = vst.msk [vmem:[%s4395_s13 + $0x38] sm:$0xff] %vm2363_vm13, %v2607_v31  ;;  %v2616_v55 = vmul.f32 %v2599_v61, %v4553_v53  ;;  %v2618_v62 = vmul.f32 %v2599_v61, %v4555_v37  ;;  %v2619_v11 = vmul.f32 %v2599_v61, %v4556_v3  ;;  %2640 = vst.msk [vmem:[%s4395_s13 + $0x40] sm:$0xff] %vm2363_vm13, %v2608_v60  ;;  %v4559_v35 = vmax.f32 %v4304_v34, 0.0 }
 0x55f   : > { %2641 = vst.msk [vmem:[%s4395_s13 + $0x48] sm:$0xff] %vm2363_vm13, %v2609_v8  ;;  %2642 = vst.msk [vmem:[%s4395_s13 + $0x50] sm:$0xff] %vm2363_vm13, %v2610_v23  ;;  %v2620_v57 = vmul.f32 %v2599_v61, %v4557_v12  ;;  %v4560_v42 = vmax.f32 %v4312_v17, 0.0  ;;  %v4561_v52 = vmax.f32 %v4315_v26, 0.0  ;;  %v2625_v6 = vmul.f32 %v2599_v61, %v4562_v13 }
 0x560   : > { %2643 = vst.msk [vmem:[%s4395_s13 + $0x58] sm:$0xff] %vm2363_vm13, %v2611_v48  ;;  %v2622_v5 = vmul.f32 %v2599_v61, %v4559_v35  ;;  %2644 = vst.msk [vmem:[%s4395_s13 + $0x60] sm:$0xff] %vm2363_vm13, %v2612_v19  ;;  %v4563_v33 = vmax.f32 %v4333_v30, 0.0  ;;  %v2627_v34 = vmul.f32 %v2599_v61, %v4564_v54  ;;  %v4565_v17 = vmax.f32 %v4351_v2, 0.0 }
 0x561   : > { %v2623_v22 = vmul.f32 %v2599_v61, %v4560_v42  ;;  %2645 = vst.msk [vmem:[%s4395_s13 + $0x68] sm:$0xff] %vm2363_vm13, %v2613_v32  ;;  %2646 = vst.msk [vmem:[%s4395_s13 + $0x70] sm:$0xff] %vm2363_vm13, %v2614_v44  ;;  %v2624_v14 = vmul.f32 %v2599_v61, %v4561_v52  ;;  %v2629_v25 = vmul.f32 %v2599_v61, %v2360_v39 }
 0x562   : > { %2647 = vst.msk [vmem:[%s4395_s13 + $0x78] sm:$0xff] %vm2363_vm13, %v2615_v50  ;;  %v2626_v20 = vmul.f32 %v2599_v61, %v4563_v33  ;;  %2648 = vst.msk [vmem:[%s4395_s13 + $0x80] sm:$0xff] %vm2363_vm13, %v2616_v55  ;;  %v2628_v26 = vmul.f32 %v2599_v61, %v4565_v17  ;;  %v2630_v30 = vmul.f32 %v2599_v61, %v2361_v16 }
 0x563   : > { %2649 = vst.msk [vmem:[%s4395_s13 + $0x88] sm:$0xff] %vm2363_vm13, %v2617_v63  ;;  %2650 = vst.msk [vmem:[%s4395_s13 + $0x90] sm:$0xff] %vm2363_vm13, %v2618_v62  ;;  %v2631_v27 = vmul.f32 %v2599_v61, %v2362_v28 }
 0x564   : > { %2651 = vst.msk [vmem:[%s4395_s13 + $0x98] sm:$0xff] %vm2363_vm13, %v2619_v11  ;;  %2652 = vst.msk [vmem:[%s4395_s13 + $0xa0] sm:$0xff] %vm2363_vm13, %v2620_v57 }
 0x565   : > { %2653 = vst.msk [vmem:[%s4395_s13 + $0xa8] sm:$0xff] %vm2363_vm13, %v2621_v59  ;;  %2654 = vst.msk [vmem:[%s4395_s13 + $0xb0] sm:$0xff] %vm2363_vm13, %v2622_v5 }
 0x566   : > { %2655 = vst.msk [vmem:[%s4395_s13 + $0xb8] sm:$0xff] %vm2363_vm13, %v2623_v22  ;;  %2656 = vst.msk [vmem:[%s4395_s13 + $0xc0] sm:$0xff] %vm2363_vm13, %v2624_v14 }
 0x567   : > { %2657 = vst.msk [vmem:[%s4395_s13 + $0xc8] sm:$0xff] %vm2363_vm13, %v2625_v6  ;;  %2658 = vst.msk [vmem:[%s4395_s13 + $0xd0] sm:$0xff] %vm2363_vm13, %v2626_v20 }
 0x568   : > { %2659 = vst.msk [vmem:[%s4395_s13 + $0xd8] sm:$0xff] %vm2363_vm13, %v2627_v34  ;;  %2660 = vst.msk [vmem:[%s4395_s13 + $0xe0] sm:$0xff] %vm2363_vm13, %v2628_v26 }
 0x569   : > { %2661 = vst.msk [vmem:[%s4395_s13 + $0xe8] sm:$0xff] %vm2363_vm13, %v2629_v25  ;;  %2662 = vst.msk [vmem:[%s4395_s13 + $0xf0] sm:$0xff] %vm2363_vm13, %v2630_v30 }
 0x56a   : > { %2663 = vst.msk [vmem:[%s4395_s13 + $0xf8] sm:$0xff] %vm2363_vm13, %v2631_v27 }
 0x56b PF: > { %s17_s24 = sadd.s32 1, %s2945_s24  }
 0x56c   : > { %p14_p4 = scmp.ge.s32.totalorder %s17_s24, 4  }
 0x56e   :  { %16 = sbr.rel (!%p14_p4) target bundleno = 1 (0x1), region = 80 }

</bundles_post_ra>
